<compile_context>
chip_gen: v7x
topology: tpu7x:2x2x1
jax: 0.10.0
libtpu: 0.0.40
codegen_flags: <defaults>
</compile_context>

<pallas_src>
import math
from functools import partial

import jax
import jax.numpy as jnp
from jax.experimental import pallas as pl
from jax.experimental.pallas import tpu as pltpu

_LANE = 128


def _round_up(v, m):
    return ((v + m - 1) // m) * m


def _pad2(a, rows, cols):
    out = jnp.zeros((rows, cols), a.dtype)
    return out.at[: a.shape[0], : a.shape[1]].set(a)


# ------------------------------ fused kernel --------------------------------

def _fused_gnn_kernel(a_ref, x_ref, prew_ref, preb_ref, convw_ref,
                      postw_ref, postb_ref, o_ref,
                      h0_ref, h1_ref, x0a_ref, *,
                      alpha, n_layers, out_channels):
    f32 = jnp.float32
    bf16 = jnp.bfloat16

    l = pl.program_id(0)                 # 0 = pre_lin step, 1..n_layers = conv layers
    i = pl.program_id(1)                 # row-block index
    tm = a_ref.shape[0]                  # TILE_M (static)
    row0 = pl.multiple_of(i * tm, tm)    # row offset of this block in the scratch

    # ---- step 0: pre_lin + relu -> h^(0) and the hoisted alpha*x0 residual ----
    @pl.when(l == 0)
    def _():
        z0 = jnp.dot(x_ref[...], prew_ref[...], preferred_element_type=f32)
        x0 = jnp.maximum(z0 + preb_ref[...], 0.0)
        h0_ref[pl.ds(row0, tm), :] = x0.astype(bf16)   # h^(0) (propagation input)
        x0a_ref[pl.ds(row0, tm), :] = alpha * x0       # alpha*x0, computed ONCE

    # ---- steps 1..L: one GCN2Conv layer per grid step (ping/pong h buffers) ----
    def layer_step(h_read, h_write):
        # propagation: (1 - alpha) is pre-folded into A in the wrapper
        ax = jnp.dot(a_ref[...], h_read[...], preferred_element_type=f32)
        hc = ax + x0a_ref[pl.ds(row0, tm), :]              # initial residual: one add
        hw = jnp.dot(hc.astype(bf16), convw_ref[...],      # folded identity-map weight
                     preferred_element_type=f32)
        h_new = jnp.maximum(hw, 0.0)                       # relu
        h_write[pl.ds(row0, tm), :] = h_new.astype(bf16)

        # ---- final layer: post_lin + masked row-wise log_softmax ----
        @pl.when(l == n_layers)
        def _():
            z = jnp.dot(h_new.astype(bf16), postw_ref[...],
                        preferred_element_type=f32) + postb_ref[...]
            col = jax.lax.broadcasted_iota(jnp.int32, z.shape, 1)
            valid = col < out_channels
            zm = jnp.where(valid, z, -1e30)
            m = jnp.max(zm, axis=1, keepdims=True)
            e = jnp.where(valid, jnp.exp(z - m), 0.0)
            lse = m + jnp.log(jnp.sum(e, axis=1, keepdims=True))
            o_ref[pl.ds(row0, tm), :] = z - lse

    odd = (l % 2) == 1

    @pl.when(jnp.logical_and(l > 0, odd))
    def _():
        layer_step(h0_ref, h1_ref)       # odd layers: read h0, write h1

    @pl.when(jnp.logical_and(l > 0, jnp.logical_not(odd)))
    def _():
        layer_step(h1_ref, h0_ref)       # even layers: read h1, write h0


# ------------------------------ model wrapper -------------------------------

def gnn_forward(params, x, a_hat):
    """Mirrors GNN.forward in eval mode (dropout = identity)."""
    n = x.shape[0]
    fin_pad = params["pre_w"].shape[0]
    fh_pad = params["pre_w"].shape[1]
    fout_pad = params["post_w"].shape[1]
    out_channels = params["out_channels"]
    n_layers = int(params["conv_w"].shape[0])
    alpha = float(params["alpha"])

    # Pad N to the MXU contraction width (128; use 256-row tiles once N > 128
    # so the 2x256x256 MXU on v6e/v7x is filled).
    n128 = _round_up(n, _LANE)
    tile_m = 256 if n128 >= 256 else 128
    n_pad = _round_up(n, tile_m)
    num_blocks = n_pad // tile_m

    # Pad, cast to bf16 and fold (1 - alpha) into A_hat (hoisted out of the kernel).
    x_p = jnp.zeros((n_pad, fin_pad), jnp.bfloat16)
    x_p = x_p.at[:n, : x.shape[1]].set(x.astype(jnp.bfloat16))
    a_p = jnp.zeros((n_pad, n_pad), jnp.bfloat16)
    a_p = a_p.at[:n, :n].set(((1.0 - alpha) * a_hat).astype(jnp.bfloat16))

    kernel = partial(_fused_gnn_kernel, alpha=alpha, n_layers=n_layers,
                     out_channels=out_channels)

    grid = (n_layers + 1, num_blocks)

    in_specs = [
        pl.BlockSpec((tile_m, n_pad), lambda l, i: (i, 0)),        # A_hat row block
        pl.BlockSpec((tile_m, fin_pad), lambda l, i: (i, 0)),      # x row block
        pl.BlockSpec((fin_pad, fh_pad), lambda l, i: (0, 0)),      # pre_w (resident)
        pl.BlockSpec((1, fh_pad), lambda l, i: (0, 0)),            # pre_b
        pl.BlockSpec((None, fh_pad, fh_pad),                       # conv_w: one layer/step
                     lambda l, i: (jnp.maximum(l - 1, 0), 0, 0)),
        pl.BlockSpec((fh_pad, fout_pad), lambda l, i: (0, 0)),     # post_w
        pl.BlockSpec((1, fout_pad), lambda l, i: (0, 0)),          # post_b
    ]
    # Output stays resident in VMEM; written to HBM once at the end of the grid.
    out_specs = pl.BlockSpec((n_pad, fout_pad), lambda l, i: (0, 0))

    scratch_shapes = [
        pltpu.VMEM((n_pad, fh_pad), jnp.bfloat16),   # h ping
        pltpu.VMEM((n_pad, fh_pad), jnp.bfloat16),   # h pong
        pltpu.VMEM((n_pad, fh_pad), jnp.float32),    # alpha * x0 residual
    ]

    # VMEM budget derived from shapes (+50% and 2 MiB headroom), clamped sanely:
    # never blindly request a chip's full physical VMEM (v7x has only 64 MiB).
    vmem_need = (
        2 * tile_m * n_pad * 2                                   # A block, double-buffered
        + 2 * tile_m * fin_pad * 2                               # x block, double-buffered
        + 2 * (fin_pad * fh_pad + fh_pad * fh_pad
               + fh_pad * fout_pad) * 2                          # bf16 weights (x2 bufs)
        + 2 * (fh_pad + fout_pad) * 4                            # biases
        + 2 * n_pad * fh_pad * 2                                 # h ping/pong scratch
        + n_pad * fh_pad * 4                                     # alpha*x0 scratch
        + n_pad * fout_pad * 4                                   # resident f32 output
    )
    vmem_limit = int(min(max(vmem_need * 1.5 + (2 << 20), 32 << 20), 100 << 20))

    out = pl.pallas_call(
        kernel,
        out_shape=jax.ShapeDtypeStruct((n_pad, fout_pad), jnp.float32),
        grid=grid,
        in_specs=in_specs,
        out_specs=out_specs,
        scratch_shapes=scratch_shapes,
        compiler_params=pltpu.CompilerParams(
            # Row-block axis must stay "arbitrary": it shares the resident h scratch.
            dimension_semantics=("arbitrary", "arbitrary"),
            vmem_limit_bytes=vmem_limit),
    )(a_p, x_p, params["pre_w"], params["pre_b"], params["conv_w"],
      params["post_w"], params["post_b"])

    return out[:n, :out_channels]


# ------------------------------ setup glue ----------------------------------

def build_normalized_adjacency(edge_index, num_nodes):
    """A_hat = D^{-1/2} (A + I) D^{-1/2} as a dense [N, N] f32 matrix."""
    src, dst = edge_index
    A = jnp.zeros((num_nodes, num_nodes), jnp.float32)
    A = A.at[src, dst].set(1.0)
    A = A.at[dst, src].set(1.0)                        # undirected
    eye = jnp.eye(num_nodes, dtype=bool)
    A = jnp.where(eye, 1.0, A)                         # remove + re-add self loops
    deg = jnp.sum(A, axis=1)
    d_inv_sqrt = 1.0 / jnp.sqrt(jnp.maximum(deg, 1.0))
    return A * d_inv_sqrt[:, None] * d_inv_sqrt[None, :]


def init_params(key, in_channels, hidden_channels, out_channels, n_layers,
                alpha=0.1, theta=0.5):
    """Glorot init; fold the GCN2 identity-map into W_eff; pad to 128 lanes; bf16."""
    keys = jax.random.split(key, 2 + n_layers)

    def glorot(k, fan_in, fan_out):
        lim = math.sqrt(6.0 / (fan_in + fan_out))
        return jax.random.uniform(k, (fan_in, fan_out), jnp.float32, -lim, lim)

    fin_p = _round_up(in_channels, _LANE)
    fh_p = _round_up(hidden_channels, _LANE)
    fout_p = _round_up(out_channels, _LANE)

    pre_w = _pad2(glorot(keys[0], in_channels, hidden_channels), fin_p, fh_p)
    post_w = _pad2(glorot(keys[1], hidden_channels, out_channels), fh_p, fout_p)

    eye = jnp.eye(hidden_channels, dtype=jnp.float32)
    conv_w = []
    for l in range(n_layers):
        w_l = glorot(keys[2 + l], hidden_channels, hidden_channels)
        beta = math.log(theta / (l + 1) + 1.0)          # GCN2Conv identity-map decay
        w_eff = beta * w_l + (1.0 - beta) * eye         # fold (1-b)h + b(hW) = h@W_eff
        conv_w.append(_pad2(w_eff, fh_p, fh_p))
    conv_w = jnp.stack(conv_w, axis=0)

    return {
        "pre_w": pre_w.astype(jnp.bfloat16),
        "pre_b": jnp.zeros((1, fh_p), jnp.float32),
        "post_w": post_w.astype(jnp.bfloat16),
        "post_b": jnp.zeros((1, fout_p), jnp.float32),
        "conv_w": conv_w.astype(jnp.bfloat16),
        "alpha": float(alpha),
        "out_channels": int(out_channels),
    }


# ----------------------------------- main -----------------------------------

if __name__ == "__main__":
    key = jax.random.PRNGKey(0)
    k_feat, k_edge, k_param = jax.random.split(key, 3)

    num_nodes = 128
    num_edges = 512
    in_channels, hidden_channels, out_channels = 16, 32, 8
    n_layers = 2

    # data.x : [N, in_channels] node features
    x = jax.random.normal(k_feat, (num_nodes, in_channels), jnp.float32)
    # data.edge_index : [2, E]
    edge_index = jax.random.randint(k_edge, (2, num_edges), 0, num_nodes)
    a_hat = build_normalized_adjacency(edge_index, num_nodes)

    params = init_params(k_param, in_channels, hidden_channels,
                         out_channels, n_layers)

    out = gnn_forward(params, x, a_hat)
    out = jax.block_until_ready(out)

    # Sanity: log_softmax rows must exponentiate-sum to 1 (computed in f32).
    row_sums = jnp.exp(out).sum(axis=1)
    assert out.shape == (num_nodes, out_channels)
    assert bool(jnp.all(jnp.isfinite(out)))
    assert bool(jnp.all(jnp.abs(row_sums - 1.0) < 1e-4))

    print("KERNEL_OK")
</pallas_src>

<mosaic_0001>
module attributes {stable_mosaic.version = 11 : i64} {
  func.func @_fused_gnn_kernel(%arg0: i32, %arg1: i32, %arg2: memref<128x128xbf16, #tpu.memory_space<vmem>>, %arg3: memref<128x128xbf16, #tpu.memory_space<vmem>>, %arg4: memref<128x128xbf16, #tpu.memory_space<vmem>>, %arg5: memref<1x128xf32, #tpu.memory_space<vmem>>, %arg6: memref<1x128x128xbf16, #tpu.memory_space<vmem>>, %arg7: memref<128x128xbf16, #tpu.memory_space<vmem>>, %arg8: memref<1x128xf32, #tpu.memory_space<vmem>>, %arg9: memref<128x128xf32, #tpu.memory_space<vmem>>, %arg10: memref<128x128xbf16, #tpu.memory_space<vmem>>, %arg11: memref<128x128xbf16, #tpu.memory_space<vmem>>, %arg12: memref<128x128xf32, #tpu.memory_space<vmem>>) attributes {dimension_semantics = [#tpu.dimension_semantics<arbitrary>, #tpu.dimension_semantics<arbitrary>], iteration_bounds = array<i64: 3, 1>, scalar_prefetch = 0 : i64, scratch_operands = 3 : i64, tpu.core_type = #tpu.core_type<tc>, window_params = [{transform_indices = @transform_0, window_bounds = array<i64: 128, 128>}, {transform_indices = @transform_1, window_bounds = array<i64: 128, 128>}, {pipeline_mode = #tpu.pipeline_mode<synchronous>, transform_indices = @transform_2, window_bounds = array<i64: 128, 128>}, {pipeline_mode = #tpu.pipeline_mode<synchronous>, transform_indices = @transform_3, window_bounds = array<i64: 1, 128>}, {transform_indices = @transform_4, window_bounds = array<i64: 1, 128, 128>}, {pipeline_mode = #tpu.pipeline_mode<synchronous>, transform_indices = @transform_5, window_bounds = array<i64: 128, 128>}, {pipeline_mode = #tpu.pipeline_mode<synchronous>, transform_indices = @transform_6, window_bounds = array<i64: 1, 128>}, {pipeline_mode = #tpu.pipeline_mode<synchronous>, transform_indices = @transform_7, window_bounds = array<i64: 128, 128>}]} {
    %c128_i32 = arith.constant 128 : i32
    %0 = arith.muli %arg1, %c128_i32 : i32
    %1 = tpu.assume_multiple %0, 128 : i32
    %c0_i32 = arith.constant 0 : i32
    %2 = arith.cmpi eq, %arg0, %c0_i32 : i32
    %3 = arith.extui %2 : i1 to i32
    %c0_i32_0 = arith.constant 0 : i32
    %4 = arith.cmpi ne, %3, %c0_i32_0 : i32
    scf.if %4 {
      %c0 = arith.constant 0 : index
      %c0_10 = arith.constant 0 : index
      %25 = vector.load %arg3[%c0, %c0_10] : memref<128x128xbf16, #tpu.memory_space<vmem>>, vector<128x128xbf16>
      %c0_11 = arith.constant 0 : index
      %c0_12 = arith.constant 0 : index
      %26 = vector.load %arg4[%c0_11, %c0_12] : memref<128x128xbf16, #tpu.memory_space<vmem>>, vector<128x128xbf16>
      %cst = arith.constant dense<0.000000e+00> : vector<128x128xf32>
      %27 = tpu.matmul %25, %26, %cst {dimension_numbers = #tpu.dot_dimension_numbers<[1], [0], [0], [1], [0, 0, 1, 1], [], []>} : vector<128x128xbf16>, vector<128x128xbf16>, vector<128x128xf32> -> vector<128x128xf32>
      %c0_13 = arith.constant 0 : index
      %c0_14 = arith.constant 0 : index
      %28 = vector.load %arg5[%c0_13, %c0_14] : memref<1x128xf32, #tpu.memory_space<vmem>>, vector<1x128xf32>
      %29 = vector.broadcast %28 : vector<1x128xf32> to vector<128x128xf32>
      %30 = arith.addf %27, %29 : vector<128x128xf32>
      %cst_15 = arith.constant 0.000000e+00 : f32
      %31 = vector.broadcast %cst_15 : f32 to vector<128x128xf32>
      %32 = arith.maximumf %30, %31 : vector<128x128xf32>
      %33 = arith.truncf %32 : vector<128x128xf32> to vector<128x128xbf16>
      %34 = arith.index_cast %1 : i32 to index
      %c0_16 = arith.constant 0 : index
      %35 = vector.load %arg10[%34, %c0_16] : memref<128x128xbf16, #tpu.memory_space<vmem>>, vector<128x128xbf16>
      tpu.vector_store %arg10[%34, %c0_16], %33 {strides = array<i32>} : memref<128x128xbf16, #tpu.memory_space<vmem>>, vector<128x128xbf16>,
      %cst_17 = arith.constant 1.000000e-01 : f32
      %36 = vector.broadcast %cst_17 : f32 to vector<128x128xf32>
      %37 = arith.mulf %36, %32 : vector<128x128xf32>
      %38 = arith.index_cast %1 : i32 to index
      %c0_18 = arith.constant 0 : index
      %39 = vector.load %arg12[%38, %c0_18] : memref<128x128xf32, #tpu.memory_space<vmem>>, vector<128x128xf32>
      tpu.vector_store %arg12[%38, %c0_18], %37 {strides = array<i32>} : memref<128x128xf32, #tpu.memory_space<vmem>>, vector<128x128xf32>,
    } else {
    }
    %c2_i32 = arith.constant 2 : i32
    %c0_i32_1 = arith.constant 0 : i32
    %5 = arith.cmpi eq, %c2_i32, %c0_i32_1 : i32
    %c1_i32 = arith.constant 1 : i32
    %6 = arith.select %5, %c1_i32, %c2_i32 : i32
    %7 = arith.remsi %arg0, %6 : i32
    %c0_i32_2 = arith.constant 0 : i32
    %8 = arith.cmpi ne, %7, %c0_i32_2 : i32
    %c0_i32_3 = arith.constant 0 : i32
    %9 = arith.cmpi slt, %7, %c0_i32_3 : i32
    %c0_i32_4 = arith.constant 0 : i32
    %10 = arith.cmpi slt, %6, %c0_i32_4 : i32
    %11 = arith.xori %9, %10 : i1
    %12 = arith.andi %11, %8 : i1
    %13 = arith.addi %7, %6 : i32
    %14 = arith.select %12, %13, %7 : i32
    %c1_i32_5 = arith.constant 1 : i32
    %15 = arith.cmpi eq, %14, %c1_i32_5 : i32
    %c0_i32_6 = arith.constant 0 : i32
    %16 = arith.cmpi sgt, %arg0, %c0_i32_6 : i32
    %17 = arith.andi %16, %15 : i1
    %18 = arith.extui %17 : i1 to i32
    %c0_i32_7 = arith.constant 0 : i32
    %19 = arith.cmpi ne, %18, %c0_i32_7 : i32
    scf.if %19 {
      %c0 = arith.constant 0 : index
      %c0_10 = arith.constant 0 : index
      %25 = vector.load %arg2[%c0, %c0_10] : memref<128x128xbf16, #tpu.memory_space<vmem>>, vector<128x128xbf16>
      %c0_11 = arith.constant 0 : index
      %c0_12 = arith.constant 0 : index
      %26 = vector.load %arg10[%c0_11, %c0_12] : memref<128x128xbf16, #tpu.memory_space<vmem>>, vector<128x128xbf16>
      %cst = arith.constant dense<0.000000e+00> : vector<128x128xf32>
      %27 = tpu.matmul %25, %26, %cst {dimension_numbers = #tpu.dot_dimension_numbers<[1], [0], [0], [1], [0, 0, 1, 1], [], []>} : vector<128x128xbf16>, vector<128x128xbf16>, vector<128x128xf32> -> vector<128x128xf32>
      %28 = arith.index_cast %1 : i32 to index
      %c0_13 = arith.constant 0 : index
      %29 = vector.load %arg12[%28, %c0_13] : memref<128x128xf32, #tpu.memory_space<vmem>>, vector<128x128xf32>
      %30 = arith.addf %27, %29 : vector<128x128xf32>
      %31 = arith.truncf %30 : vector<128x128xf32> to vector<128x128xbf16>
      %c0_14 = arith.constant 0 : index
      %c0_15 = arith.constant 0 : index
      %c0_16 = arith.constant 0 : index
      %32 = vector.load %arg6[%c0_14, %c0_15, %c0_16] : memref<1x128x128xbf16, #tpu.memory_space<vmem>>, vector<1x128x128xbf16>
      %33 = vector.shape_cast %32 : vector<1x128x128xbf16> to vector<128x128xbf16>
      %cst_17 = arith.constant dense<0.000000e+00> : vector<128x128xf32>
      %34 = tpu.matmul %31, %33, %cst_17 {dimension_numbers = #tpu.dot_dimension_numbers<[1], [0], [0], [1], [0, 0, 1, 1], [], []>} : vector<128x128xbf16>, vector<128x128xbf16>, vector<128x128xf32> -> vector<128x128xf32>
      %cst_18 = arith.constant 0.000000e+00 : f32
      %35 = vector.broadcast %cst_18 : f32 to vector<128x128xf32>
      %36 = arith.maximumf %34, %35 : vector<128x128xf32>
      %37 = arith.truncf %36 : vector<128x128xf32> to vector<128x128xbf16>
      %38 = arith.index_cast %1 : i32 to index
      %c0_19 = arith.constant 0 : index
      %39 = vector.load %arg11[%38, %c0_19] : memref<128x128xbf16, #tpu.memory_space<vmem>>, vector<128x128xbf16>
      tpu.vector_store %arg11[%38, %c0_19], %37 {strides = array<i32>} : memref<128x128xbf16, #tpu.memory_space<vmem>>, vector<128x128xbf16>,
      %c2_i32_20 = arith.constant 2 : i32
      %40 = arith.cmpi eq, %arg0, %c2_i32_20 : i32
      %41 = arith.extui %40 : i1 to i32
      %c0_i32_21 = arith.constant 0 : i32
      %42 = arith.cmpi ne, %41, %c0_i32_21 : i32
      scf.if %42 {
        %43 = arith.truncf %36 : vector<128x128xf32> to vector<128x128xbf16>
        %c0_22 = arith.constant 0 : index
        %c0_23 = arith.constant 0 : index
        %44 = vector.load %arg7[%c0_22, %c0_23] : memref<128x128xbf16, #tpu.memory_space<vmem>>, vector<128x128xbf16>
        %cst_24 = arith.constant dense<0.000000e+00> : vector<128x128xf32>
        %45 = tpu.matmul %43, %44, %cst_24 {dimension_numbers = #tpu.dot_dimension_numbers<[1], [0], [0], [1], [0, 0, 1, 1], [], []>} : vector<128x128xbf16>, vector<128x128xbf16>, vector<128x128xf32> -> vector<128x128xf32>
        %c0_25 = arith.constant 0 : index
        %c0_26 = arith.constant 0 : index
        %46 = vector.load %arg8[%c0_25, %c0_26] : memref<1x128xf32, #tpu.memory_space<vmem>>, vector<1x128xf32>
        %47 = vector.broadcast %46 : vector<1x128xf32> to vector<128x128xf32>
        %48 = arith.addf %45, %47 : vector<128x128xf32>
        %49 = tpu.iota {dimensions = array<i32: 1>} : vector<128x128xi32>
        %c8_i32 = arith.constant 8 : i32
        %50 = vector.broadcast %c8_i32 : i32 to vector<128x128xi32>
        %51 = arith.cmpi slt, %49, %50 : vector<128x128xi32>
        %cst_27 = arith.constant -1.000000e+30 : f32
        %52 = vector.broadcast %cst_27 : f32 to vector<128x128xf32>
        %53 = arith.select %51, %48, %52 : vector<128x128xi1>, vector<128x128xf32>
        %cst_28 = arith.constant dense<0xFF800000> : vector<128xf32>
        %54 = vector.multi_reduction <maximumf>, %53, %cst_28 [1] : vector<128x128xf32> to vector<128xf32>
        %55 = vector.shape_cast %54 : vector<128xf32> to vector<128x1xf32>
        %56 = vector.broadcast %55 : vector<128x1xf32> to vector<128x128xf32>
        %57 = arith.subf %48, %56 : vector<128x128xf32>
        %58 = math.exp %57 : vector<128x128xf32>
        %cst_29 = arith.constant 0.000000e+00 : f32
        %59 = vector.broadcast %cst_29 : f32 to vector<128x128xf32>
        %60 = arith.select %51, %58, %59 : vector<128x128xi1>, vector<128x128xf32>
        %cst_30 = arith.constant dense<0.000000e+00> : vector<128xf32>
        %61 = vector.multi_reduction <add>, %60, %cst_30 [1] : vector<128x128xf32> to vector<128xf32>
        %62 = vector.shape_cast %61 : vector<128xf32> to vector<128x1xf32>
        %63 = math.log %62 : vector<128x1xf32>
        %64 = arith.addf %55, %63 : vector<128x1xf32>
        %65 = vector.broadcast %64 : vector<128x1xf32> to vector<128x128xf32>
        %66 = arith.subf %48, %65 : vector<128x128xf32>
        %67 = arith.index_cast %1 : i32 to index
        %c0_31 = arith.constant 0 : index
        %68 = vector.load %arg9[%67, %c0_31] : memref<128x128xf32, #tpu.memory_space<vmem>>, vector<128x128xf32>
        tpu.vector_store %arg9[%67, %c0_31], %66 {strides = array<i32>} : memref<128x128xf32, #tpu.memory_space<vmem>>, vector<128x128xf32>,
      } else {
      }
    } else {
    }
    %c0_i32_8 = arith.constant 0 : i32
    %20 = arith.cmpi sgt, %arg0, %c0_i32_8 : i32
    %true = arith.constant true
    %21 = arith.xori %15, %true : i1
    %22 = arith.andi %20, %21 : i1
    %23 = arith.extui %22 : i1 to i32
    %c0_i32_9 = arith.constant 0 : i32
    %24 = arith.cmpi ne, %23, %c0_i32_9 : i32
    scf.if %24 {
      %c0 = arith.constant 0 : index
      %c0_10 = arith.constant 0 : index
      %25 = vector.load %arg2[%c0, %c0_10] : memref<128x128xbf16, #tpu.memory_space<vmem>>, vector<128x128xbf16>
      %c0_11 = arith.constant 0 : index
      %c0_12 = arith.constant 0 : index
      %26 = vector.load %arg11[%c0_11, %c0_12] : memref<128x128xbf16, #tpu.memory_space<vmem>>, vector<128x128xbf16>
      %cst = arith.constant dense<0.000000e+00> : vector<128x128xf32>
      %27 = tpu.matmul %25, %26, %cst {dimension_numbers = #tpu.dot_dimension_numbers<[1], [0], [0], [1], [0, 0, 1, 1], [], []>} : vector<128x128xbf16>, vector<128x128xbf16>, vector<128x128xf32> -> vector<128x128xf32>
      %28 = arith.index_cast %1 : i32 to index
      %c0_13 = arith.constant 0 : index
      %29 = vector.load %arg12[%28, %c0_13] : memref<128x128xf32, #tpu.memory_space<vmem>>, vector<128x128xf32>
      %30 = arith.addf %27, %29 : vector<128x128xf32>
      %31 = arith.truncf %30 : vector<128x128xf32> to vector<128x128xbf16>
      %c0_14 = arith.constant 0 : index
      %c0_15 = arith.constant 0 : index
      %c0_16 = arith.constant 0 : index
      %32 = vector.load %arg6[%c0_14, %c0_15, %c0_16] : memref<1x128x128xbf16, #tpu.memory_space<vmem>>, vector<1x128x128xbf16>
      %33 = vector.shape_cast %32 : vector<1x128x128xbf16> to vector<128x128xbf16>
      %cst_17 = arith.constant dense<0.000000e+00> : vector<128x128xf32>
      %34 = tpu.matmul %31, %33, %cst_17 {dimension_numbers = #tpu.dot_dimension_numbers<[1], [0], [0], [1], [0, 0, 1, 1], [], []>} : vector<128x128xbf16>, vector<128x128xbf16>, vector<128x128xf32> -> vector<128x128xf32>
      %cst_18 = arith.constant 0.000000e+00 : f32
      %35 = vector.broadcast %cst_18 : f32 to vector<128x128xf32>
      %36 = arith.maximumf %34, %35 : vector<128x128xf32>
      %37 = arith.truncf %36 : vector<128x128xf32> to vector<128x128xbf16>
      %38 = arith.index_cast %1 : i32 to index
      %c0_19 = arith.constant 0 : index
      %39 = vector.load %arg10[%38, %c0_19] : memref<128x128xbf16, #tpu.memory_space<vmem>>, vector<128x128xbf16>
      tpu.vector_store %arg10[%38, %c0_19], %37 {strides = array<i32>} : memref<128x128xbf16, #tpu.memory_space<vmem>>, vector<128x128xbf16>,
      %c2_i32_20 = arith.constant 2 : i32
      %40 = arith.cmpi eq, %arg0, %c2_i32_20 : i32
      %41 = arith.extui %40 : i1 to i32
      %c0_i32_21 = arith.constant 0 : i32
      %42 = arith.cmpi ne, %41, %c0_i32_21 : i32
      scf.if %42 {
        %43 = arith.truncf %36 : vector<128x128xf32> to vector<128x128xbf16>
        %c0_22 = arith.constant 0 : index
        %c0_23 = arith.constant 0 : index
        %44 = vector.load %arg7[%c0_22, %c0_23] : memref<128x128xbf16, #tpu.memory_space<vmem>>, vector<128x128xbf16>
        %cst_24 = arith.constant dense<0.000000e+00> : vector<128x128xf32>
        %45 = tpu.matmul %43, %44, %cst_24 {dimension_numbers = #tpu.dot_dimension_numbers<[1], [0], [0], [1], [0, 0, 1, 1], [], []>} : vector<128x128xbf16>, vector<128x128xbf16>, vector<128x128xf32> -> vector<128x128xf32>
        %c0_25 = arith.constant 0 : index
        %c0_26 = arith.constant 0 : index
        %46 = vector.load %arg8[%c0_25, %c0_26] : memref<1x128xf32, #tpu.memory_space<vmem>>, vector<1x128xf32>
        %47 = vector.broadcast %46 : vector<1x128xf32> to vector<128x128xf32>
        %48 = arith.addf %45, %47 : vector<128x128xf32>
        %49 = tpu.iota {dimensions = array<i32: 1>} : vector<128x128xi32>
        %c8_i32 = arith.constant 8 : i32
        %50 = vector.broadcast %c8_i32 : i32 to vector<128x128xi32>
        %51 = arith.cmpi slt, %49, %50 : vector<128x128xi32>
        %cst_27 = arith.constant -1.000000e+30 : f32
        %52 = vector.broadcast %cst_27 : f32 to vector<128x128xf32>
        %53 = arith.select %51, %48, %52 : vector<128x128xi1>, vector<128x128xf32>
        %cst_28 = arith.constant dense<0xFF800000> : vector<128xf32>
        %54 = vector.multi_reduction <maximumf>, %53, %cst_28 [1] : vector<128x128xf32> to vector<128xf32>
        %55 = vector.shape_cast %54 : vector<128xf32> to vector<128x1xf32>
        %56 = vector.broadcast %55 : vector<128x1xf32> to vector<128x128xf32>
        %57 = arith.subf %48, %56 : vector<128x128xf32>
        %58 = math.exp %57 : vector<128x128xf32>
        %cst_29 = arith.constant 0.000000e+00 : f32
        %59 = vector.broadcast %cst_29 : f32 to vector<128x128xf32>
        %60 = arith.select %51, %58, %59 : vector<128x128xi1>, vector<128x128xf32>
        %cst_30 = arith.constant dense<0.000000e+00> : vector<128xf32>
        %61 = vector.multi_reduction <add>, %60, %cst_30 [1] : vector<128x128xf32> to vector<128xf32>
        %62 = vector.shape_cast %61 : vector<128xf32> to vector<128x1xf32>
        %63 = math.log %62 : vector<128x1xf32>
        %64 = arith.addf %55, %63 : vector<128x1xf32>
        %65 = vector.broadcast %64 : vector<128x1xf32> to vector<128x128xf32>
        %66 = arith.subf %48, %65 : vector<128x128xf32>
        %67 = arith.index_cast %1 : i32 to index
        %c0_31 = arith.constant 0 : index
        %68 = vector.load %arg9[%67, %c0_31] : memref<128x128xf32, #tpu.memory_space<vmem>>, vector<128x128xf32>
        tpu.vector_store %arg9[%67, %c0_31], %66 {strides = array<i32>} : memref<128x128xf32, #tpu.memory_space<vmem>>, vector<128x128xf32>,
      } else {
      }
    } else {
    }
    return
  }
  func.func @transform_0(%arg0: i32, %arg1: i32) -> (i32, i32) {
    %c0_i32 = arith.constant 0 : i32
    %c0_i32_0 = arith.constant 0 : i32
    return %arg1, %c0_i32 : i32, i32
  }
  func.func @transform_1(%arg0: i32, %arg1: i32) -> (i32, i32) {
    %c0_i32 = arith.constant 0 : i32
    %c0_i32_0 = arith.constant 0 : i32
    return %arg1, %c0_i32 : i32, i32
  }
  func.func @transform_2(%arg0: i32, %arg1: i32) -> (i32, i32) {
    %c0_i32 = arith.constant 0 : i32
    %c0_i32_0 = arith.constant 0 : i32
    %c0_i32_1 = arith.constant 0 : i32
    return %c0_i32, %c0_i32_0 : i32, i32
  }
  func.func @transform_3(%arg0: i32, %arg1: i32) -> (i32, i32) {
    %c0_i32 = arith.constant 0 : i32
    %c0_i32_0 = arith.constant 0 : i32
    %c0_i32_1 = arith.constant 0 : i32
    return %c0_i32, %c0_i32_0 : i32, i32
  }
  func.func @transform_4(%arg0: i32, %arg1: i32) -> (i32, i32, i32) {
    %c1_i32 = arith.constant 1 : i32
    %0 = arith.subi %arg0, %c1_i32 : i32
    %c0_i32 = arith.constant 0 : i32
    %1 = arith.maxsi %0, %c0_i32 : i32
    %c0_i32_0 = arith.constant 0 : i32
    %c0_i32_1 = arith.constant 0 : i32
    %c0_i32_2 = arith.constant 0 : i32
    return %1, %c0_i32_0, %c0_i32_1 : i32, i32, i32
  }
  func.func @transform_5(%arg0: i32, %arg1: i32) -> (i32, i32) {
    %c0_i32 = arith.constant 0 : i32
    %c0_i32_0 = arith.constant 0 : i32
    %c0_i32_1 = arith.constant 0 : i32
    return %c0_i32, %c0_i32_0 : i32, i32
  }
  func.func @transform_6(%arg0: i32, %arg1: i32) -> (i32, i32) {
    %c0_i32 = arith.constant 0 : i32
    %c0_i32_0 = arith.constant 0 : i32
    %c0_i32_1 = arith.constant 0 : i32
    return %c0_i32, %c0_i32_0 : i32, i32
  }
  func.func @transform_7(%arg0: i32, %arg1: i32) -> (i32, i32) {
    %c0_i32 = arith.constant 0 : i32
    %c0_i32_0 = arith.constant 0 : i32
    %c0_i32_1 = arith.constant 0 : i32
    return %c0_i32, %c0_i32_0 : i32, i32
  }
}

</mosaic_0001>

<bundles_post_ra>
// kernel: tpu_custom_call.1
= control target key start
LH: loop header
LB: loop body
LE: loop exit
PB: predicated region body
PF: predicated region fallthrough
CT: control target
= control target key end

     0   :  { %s4280_s0 = inlined_call_operand.hbm [shape: bf16[128,128], index: 0, kind: input, shape index: {}]   ;;  %s4281_s1 = inlined_call_operand.hbm [shape: bf16[128,128], index: 1, kind: input, shape index: {}]   ;;  %s4282_s2 = inlined_call_operand.hbm [shape: bf16[128,128], index: 2, kind: input, shape index: {}]   ;;  %s4283_s3 = inlined_call_operand.vmem [shape: f32[1,128], index: 3, kind: input, shape index: {}]   ;;  %s4284_s4 = inlined_call_operand.hbm [shape: bf16[2,128,128], index: 4, kind: input, shape index: {}]   ;;  %s4285_s5 = inlined_call_operand.hbm [shape: bf16[128,128], index: 5, kind: input, shape index: {}]   ;;  %s4286_s6 = inlined_call_operand.vmem [shape: f32[1,128], index: 6, kind: input, shape index: {}]   ;;  %s4287_s7 = inlined_call_operand.hbm [shape: f32[128,128], index: 7, kind: output, shape index: {}]  }
   0x1   :  { %4293 = sst [smem:[#allocation20_spill]] %s4281_s1 }
   0x2   :  { %12 = vsyncpa [#allocation6], 0 }
   0x3   :  { %13 = vsyncpa [#allocation9], 0 }
   0x4   :  { %14 = vsyncpa [#allocation12], 0 }
   0x5   :  { %16 = vsyncpa [#allocation12 + $0x1], 0 }
   0x6   :  { %17 = vsyncpa [#allocation7], 0  ;;  %s3491_s24 = smov 0   ;;  %s3493_s25 = smov 0  }
   0x7   :  { %s3495_s26 = smov 0   ;;  %s3497_s27 = smov 0  }
   0x8   :  { %s3499_s28 = smov 0   ;;  %s3501_s29 = smov 0  }
   0x9 LB: > { %s3520_s30 = sadd.s32 4294967295, %s3439_s29   ;;  %p155_p0 = scmp.ne.s32.totalorder %s3423_s25, %s3419_s24  ;;  %s3439_s29 = sphi %s3501_s29, %s23_s29   ;;  %s3435_s28 = sphi %s3499_s28, %s4315_s28   ;;  %s3431_s27 = sphi %s3497_s27, %s4314_s27   ;;  %s3427_s26 = sphi %s3495_s26, %s4313_s26   ;;  %s3423_s25 = sphi %s3493_s25, %s4312_s25   ;;  %s3419_s24 = sphi %s3491_s24, %s4311_s24  }
   0xa   : > { %p4288_p1 = scmp.eq.s32.totalorder %s3520_s30, 0  ;;  %p2428_p2 = scmp.ge.s32.totalorder %s3439_s29, 1 }
   0xb   : > { %p229_p3 = scmp.lt.s32.totalorder %s3439_s29, 4  ;;  %s3441_s10 = smov [#allocation8]  }
   0xc   : > { %p3528_p4 = por %p4288_p1, %p155_p0  ;;  %s260_s11 = sshll.u32 %s3441_s10, 4  ;;  %s261_s11 = int_to_ptr.vmem [resolvable:$true] %s260_s11 }
   0xd   : > { %p3532_p5 = pnand %p2428_p2, %p229_p3  ;;  %s3442_s13 = smov [#allocation13]  }
   0xe   : > { %s4294_s8 = scalar_select %p3528_p4, 1, 0 }
   0xf   : > { %s4295_s9 = scalar_select %p3532_p5, 1, 0 }
  0x10   : > { %p2928_p6 = pneg %p3532_p5  ;;  %s289_s14 = sshll.u32 %s3442_s13, 4  ;;  %s3544_s14 = int_to_ptr.vmem [resolvable:$true] %s289_s14 }
  0x11   : > { %s4297_s1 = sld [smem:[#allocation20_spill]] }
  0x12   : > { %p3540_p7 = pnand %p2928_p6, %p4288_p1 }
  0x14   : > { %p3554_p9 = pneg %p3540_p7 }
  0x17   : > { %s3205_s17 = scalar_lea.hbm %s4297_s1, 1024 }
  0x18   : > { %p3206_p8 = scmp.ne.s32.totalorder %s4297_s1, %s3205_s17  ;;  %p3212_p12 = scmp.lt.u32.totalorder %s3205_s17, %s4297_s1 }
  0x1a   : > { %p3208_p10 = pnand %p3554_p9, %p3206_p8 }
  0x1c   : > { %p3209_p11 = pneg %p3208_p10 }
  0x1e   : > { %p3214_p13 = pnand %p3212_p12, %p3209_p11 }
  0x20   : > { %3217 = shalt.err (!%p3214_p13)
}
  0x21   : > { %s3218_s23 = scalar_lea.vmem %s261_s11, 1024  ;;  %p3226_p6 = scmp.lt.s32.totalorder %s261_s11, %s261_s11 }
  0x22   : > { %p3219_p0 = scmp.ne.s32.totalorder %s261_s11, %s3218_s23  ;;  %p3227_p1 = scmp.lt.s32.totalorder %s3218_s23, %s3218_s23 }
  0x24   : > { %p3221_p2 = pnand %p3219_p0, %p3554_p9  ;;  %p3228_p4 = por %p3227_p1, %p3226_p6 }
  0x26   : > { %p3222_p3 = pneg %p3221_p2 }
  0x28   : > { %p3229_p5 = pnand %p3228_p4, %p3222_p3 }
  0x2a   : > { %3232 = shalt.err (!%p3229_p5)
}
  0x2b   : > { %s4291_s24 = smov 64   ;;  %s4292_s10 = smov 4  }
  0x2c   : > { %2934 = dma.hbm_to_vmem [thread:$0]  (!%p3540_p7), %s4297_s1, 1024, %s261_s11, [#allocation9], %s4291_s24, %s4291_s24, %s4292_s10  }
  0x2d   : > { %s3233_s18 = scalar_lea.hbm %s4285_s5, 1024 }
  0x2e   : > { %p3234_p1 = scmp.ne.s32.totalorder %s4285_s5, %s3233_s18  ;;  %p3240_p8 = scmp.lt.u32.totalorder %s3233_s18, %s4285_s5 }
  0x30   : > { %p3236_p4 = pnand %p3234_p1, %p3554_p9 }
  0x32   : > { %p3237_p5 = pneg %p3236_p4 }
  0x34   : > { %p3242_p10 = pnand %p3240_p8, %p3237_p5 }
  0x36   : > { %3245 = shalt.err (!%p3242_p10)
}
  0x37   : > { %s3246_s11 = scalar_lea.vmem %s3544_s14, 1024  ;;  %p3254_p0 = scmp.lt.s32.totalorder %s3544_s14, %s3544_s14 }
  0x38   : > { %p3247_p11 = scmp.ne.s32.totalorder %s3544_s14, %s3246_s11  ;;  %p3255_p2 = scmp.lt.s32.totalorder %s3246_s11, %s3246_s11 }
  0x3a   : > { %p3249_p12 = pnand %p3247_p11, %p3554_p9  ;;  %p3256_p3 = por %p3255_p2, %p3254_p0 }
  0x3c   : > { %p3250_p13 = pneg %p3249_p12 }
  0x3e   : > { %p3257_p6 = pnand %p3256_p3, %p3250_p13 }
  0x40   : > { %3260 = shalt.err (!%p3257_p6)
}
  0x41   : > { %2940 = dma.hbm_to_vmem [thread:$0]  (!%p3540_p7), %s4285_s5, 1024, %s3544_s14, [#allocation12], %s4291_s24, %s4291_s24, %s4292_s10  }
  0x42   : > { %s3445_s16 = smov [#allocation5]   ;;  %s3446_s18 = smov [#allocation10]  }
  0x43   : > { %s244_s17 = sshll.u32 %s3445_s16, 4  ;;  %s273_s19 = sshll.u32 %s3446_s18, 4  ;;  %s245_s17 = int_to_ptr.vmem [resolvable:$true] %s244_s17  ;;  %s3599_s19 = int_to_ptr.vmem [resolvable:$true] %s273_s19 }
  0x44   : > { %s3261_s23 = scalar_lea.hbm %s4280_s0, 1024 }
  0x45   : > { %p3262_p1 = scmp.ne.s32.totalorder %s4280_s0, %s3261_s23  ;;  %p3268_p8 = scmp.lt.u32.totalorder %s3261_s23, %s4280_s0 }
  0x47   : > { %p3264_p4 = pnand %p3262_p1, %p3554_p9 }
  0x49   : > { %p3265_p5 = pneg %p3264_p4 }
  0x4b   : > { %p3270_p10 = pnand %p3268_p8, %p3265_p5 }
  0x4d   : > { %3273 = shalt.err (!%p3270_p10)
}
  0x4e   : > { %s3274_s15 = scalar_lea.vmem %s245_s17, 1024  ;;  %p3282_p0 = scmp.lt.s32.totalorder %s245_s17, %s245_s17 }
  0x4f   : > { %p3275_p11 = scmp.ne.s32.totalorder %s245_s17, %s3274_s15  ;;  %p3283_p2 = scmp.lt.s32.totalorder %s3274_s15, %s3274_s15 }
  0x51   : > { %p3277_p12 = pnand %p3275_p11, %p3554_p9  ;;  %p3284_p3 = por %p3283_p2, %p3282_p0 }
  0x53   : > { %p3278_p13 = pneg %p3277_p12 }
  0x55   : > { %p3285_p6 = pnand %p3284_p3, %p3278_p13 }
  0x57   : > { %3288 = shalt.err (!%p3285_p6)
}
  0x58   : > { %2931 = dma.hbm_to_vmem [thread:$0]  (!%p3540_p7), %s4280_s0, 1024, %s245_s17, [#allocation6], %s4291_s24, %s4291_s24, %s4292_s10  }
  0x59   : > { %s3289_s22 = scalar_lea.hbm %s4282_s2, 1024 }
  0x5a   : > { %p3290_p1 = scmp.ne.s32.totalorder %s4282_s2, %s3289_s22  ;;  %p3296_p8 = scmp.lt.u32.totalorder %s3289_s22, %s4282_s2 }
  0x5c   : > { %p3292_p4 = pnand %p3290_p1, %p3554_p9 }
  0x5e   : > { %p3293_p5 = pneg %p3292_p4 }
  0x60   : > { %p3298_p10 = pnand %p3296_p8, %p3293_p5 }
  0x62   : > { %3301 = shalt.err (!%p3298_p10)
}
  0x63   : > { %s3302_s17 = scalar_lea.vmem %s3599_s19, 1024  ;;  %p3310_p0 = scmp.lt.s32.totalorder %s3599_s19, %s3599_s19 }
  0x64   : > { %p3303_p11 = scmp.ne.s32.totalorder %s3599_s19, %s3302_s17  ;;  %p3311_p2 = scmp.lt.s32.totalorder %s3302_s17, %s3302_s17 }
  0x66   : > { %p3305_p12 = pnand %p3303_p11, %p3554_p9  ;;  %p3312_p3 = por %p3311_p2, %p3310_p0 }
  0x68   : > { %p3306_p13 = pneg %p3305_p12 }
  0x6a   : > { %p3313_p6 = pnand %p3312_p3, %p3306_p13 }
  0x6c   : > { %3316 = shalt.err (!%p3313_p6)
}
  0x6d   : > { %2937 = dma.hbm_to_vmem [thread:$0]  (!%p3540_p7), %s4282_s2, 1024, %s3599_s19, [#allocation9], %s4291_s24, %s4291_s24, %s4292_s10  }
  0x6e   : > { %s35_s20 = sadd.s32 1, %s3435_s28  ;;  %s2426_s16 = sadd.s32 4294967295, %s3435_s28 }
  0x6f   : > { %p37_p9 = scmp.ge.s32.totalorder %s35_s20, 3  ;;  %p134_p1 = scmp.gt.s32.totalorder %s2426_s16, 0 }
  0x70   : > { %p149_p4 = scmp.ne.s32.totalorder %s3427_s26, %s3423_s25  ;;  %p150_p5 = scmp.eq.s32.totalorder %s3439_s29, 0 }
  0x71   : > { %s4317_s20 = smov (%p37_p9, %s35_s20), 0  ;;  %s4319_s16 = smov (!%p134_p1, %s2426_s16), 0 }
  0x72   : > { %s2427_s12 = sadd.s32 4294967295, %s4317_s20  ;;  %s142_s18 = sadd.s32 1, %s3427_s26 }
  0x73   : > { %p137_p8 = scmp.gt.s32.totalorder %s2427_s12, 0  ;;  %p3657_p10 = por %p150_p5, %p149_p4 }
  0x74   : > { %p2949_p7 = scmp.lt.s32.totalorder %s3439_s29, 3  ;;  %s306_s19 = sand.u32 1, %s3439_s29  }
  0x75   : > { %s4321_s12 = smov (!%p137_p8, %s2427_s12), 0  ;;  %s308_s22 = sand.u32 1, %s3427_s26  }
  0x76   : > { %s139_s23 = ssub.s32 %s4319_s16, %s4321_s12  ;;  %s2434_s11 = sshll.u32 %s308_s22, 6 }
  0x77   : > { %p140_p11 = scmp.eq.s32.totalorder %s139_s23, 0  ;;  %s2521_s13 = sshll.u32 %s4319_s16, 10 }
  0x78   : > { %s310_s14 = scalar_lea.vmem [#allocation11], %s2434_s11  ;;  %s3670_s10 = scalar_lea.hbm %s4284_s4, %s2521_s13 }
  0x79   : > { %s320_s17 = sshll.u32 %s310_s14, 4  ;;  %p3678_p12 = pnand %p2949_p7, %p3657_p10  ;;  %s3672_s17 = int_to_ptr.vmem [resolvable:$true] %s320_s17 }
  0x7a   : > { %s3665_s15 = scalar_select %p140_p11, %s3427_s26, %s142_s18  }
  0x7b   : > { %s3682_s16 = scalar_lea.sflag [#allocation12], %s306_s19  ;;  %s3317_s18 = scalar_lea.hbm %s3670_s10, 1024 }
  0x7c   : > { %p3318_p13 = scmp.ne.s32.totalorder %s3670_s10, %s3317_s18  ;;  %p3319_p0 = pneg %p3678_p12 }
  0x7d   : > { %s3322_s21 = scalar_lea.hbm %s4284_s4, 2048  ;;  %p3323_p6 = scmp.lt.u32.totalorder %s3670_s10, %s4284_s4 }
  0x7e   : > { %p3320_p2 = pnand %p3319_p0, %p3318_p13  ;;  %p3324_p9 = scmp.lt.u32.totalorder %s3322_s21, %s3317_s18 }
  0x7f   : > { %p3326_p4 = scmp.lt.u32.totalorder %s3317_s18, %s3670_s10 }
  0x80   : > { %p3321_p3 = pneg %p3320_p2  ;;  %p3325_p1 = por %p3324_p9, %p3323_p6 }
  0x82   : > { %p3327_p5 = por %p3326_p4, %p3325_p1 }
  0x84   : > { %p3328_p8 = pnand %p3327_p5, %p3321_p3 }
  0x86   : > { %3331 = shalt.err (!%p3328_p8)
}
  0x87   : > { %s3332_s19 = scalar_lea.vmem %s3672_s17, 1024  ;;  %s3447_s13 = smov [#allocation11]  }
  0x88   : > { %p3333_p10 = scmp.ne.s32.totalorder %s3672_s17, %s3332_s19  ;;  %s3337_s14 = sshll.u32 %s3447_s13, 4  ;;  %s3338_s14 = int_to_ptr.vmem [resolvable:$false] %s3337_s14 }
  0x89   : > { %s3339_s1 = scalar_lea.vmem %s3338_s14, 2048  ;;  %p3340_p13 = scmp.lt.s32.totalorder %s3672_s17, %s3338_s14 }
  0x8a   : > { %p3335_p7 = pnand %p3333_p10, %p3319_p0  ;;  %p3341_p2 = scmp.lt.s32.totalorder %s3339_s1, %s3332_s19 }
  0x8c   : > { %p3336_p11 = pneg %p3335_p7  ;;  %p3342_p6 = por %p3341_p2, %p3340_p13 }
  0x8e   : > { %p3343_p9 = pnand %p3342_p6, %p3336_p11 }
  0x90   : > { %3346 = shalt.err (!%p3343_p9)
}
  0x91   : > { %s4301_s18 = smov 4   ;;  %s4302_s24 = smov 64  }
  0x92   : > { %2944 = dma.hbm_to_vmem [thread:$0]  (!%p3678_p12), %s3670_s10, 1024, %s3672_s17, %s3682_s16, %s4302_s24, %s4302_s24, %s4301_s18  }
  0x93   : > { %p4303_p0 = scmp.ne.s32.totalorder %s4295_s9, 0 }
  0x94   : > { %p4304_p3 = scmp.eq.s32.totalorder (!%p4303_p0), %s3520_s30, 0 }
  0x95   : > { %332 = sbr.rel (%p4303_p0) target bundleno = 2584 (0xa18), region = 48 }
  0x9c   : > { %3398 = dma.done.wait (%p4304_p3), [#allocation6], 1024   ;;  %p4305_p1 = pmov %p4304_p3 }
  0x9e   : > { %3400 = vsyncadd (%p4305_p1), [#allocation6], 4294966272  ;;  %p4306_p4 = pmov %p4305_p1 }
  0x9f   : > { %p4307_p5 = pmov %p4305_p1 }
  0xa0   : > { %3402 = dma.done.wait (%p4306_p4), [#allocation9], 2048  }
  0xa1   : > { %3404 = vsyncadd (%p4307_p5), [#allocation9], 4294965248  ;;  %s346_s12 = sand.u32 1, %s3520_s30   ;;  %s348_s10 = sand.u32 1, %s3423_s25  }
  0xa2   : > { %s2442_s17 = sshll.u32 %s348_s10, 6  ;;  %s347_s9 = scalar_lea.sflag [#allocation12], %s346_s12 }
  0xa3   : > { %s3725_s16 = scalar_lea.vmem [#allocation11], %s2442_s17  ;;  %p4308_p12 = scmp.ne.s32.totalorder %s4294_s8, 0 }
  0xa5   : > { %3406 = dma.done.wait (%p4308_p12), %s347_s9, 1024  }
  0xa6   : > { %3408 = vsyncadd (%p4308_p12), %s347_s9, 4294966272  ;;  %p4309_p8 = pmov %p4305_p1 }
  0xa7   : > { %p4310_p10 = pmov %p4305_p1 }
  0xa8   : > { %3410 = dma.done.wait (%p4309_p8), [#allocation12], 1024  }
  0xa9   : > { %3412 = vsyncadd (%p4310_p10), [#allocation12], 4294966272  ;;  %p2444_p7 = scmp.ne.s32.totalorder %s3431_s27, 0 }
  0xaa   : > { %v3013_v0 = vld [vmem:[#allocation10] sm:$0xff] (!%p2444_p7)   ;;  %v3014_v1 = vld [vmem:[#allocation10 + $0x8] sm:$0xff] (!%p2444_p7)   ;;  %v3015_v2 = vld [vmem:[#allocation10 + $0x10] sm:$0xff] (!%p2444_p7)  }
  0xab   : > { %390 = sbr.rel (%p2444_p7) target bundleno = 436 (0x1b4), region = 72  ;;  %2634 = vmatprep.subr.bf16.mxu0 (!%p2444_p7), %v3013_v0  ;;  %2858 = vmatprep.subr.bf16.mxu1 (!%p2444_p7), %v3013_v0  ;;  %v3016_v3 = vld [vmem:[#allocation10 + $0x18] sm:$0xff] (!%p2444_p7)   ;;  %v3021_v4 = vld [vmem:[#allocation8] sm:$0xff] (!%p2444_p7)   ;;  %v3018_v7 = vld [vmem:[#allocation10 + $0x28] sm:$0xff] (!%p2444_p7)  }
  0xac   : > { %2635 = vmatpush3.bf16.msra.mxu0 (!%p2444_p7), %v3013_v0  ;;  %2866 = vmatpush3.bf16.msra.mxu1 (!%p2444_p7), %v3013_v0  ;;  %v3022_v5 = vld [vmem:[#allocation8 + $0x20] sm:$0xff] (!%p2444_p7)   ;;  %v3019_v8 = vld [vmem:[#allocation10 + $0x30] sm:$0xff] (!%p2444_p7)   ;;  %v3020_v9 = vld [vmem:[#allocation10 + $0x38] sm:$0xff] (!%p2444_p7)  }
  0xad   : > { %2636 = vmatprep.subr.bf16.mxu0 (!%p2444_p7), %v3014_v1  ;;  %2859 = vmatprep.subr.bf16.mxu1 (!%p2444_p7), %v3014_v1  ;;  %v3017_v6 = vld [vmem:[#allocation10 + $0x20] sm:$0xff] (!%p2444_p7)   ;;  %v3023_v10 = vld [vmem:[#allocation8 + $0x8] sm:$0xff] (!%p2444_p7)   ;;  %v3025_v12 = vld [vmem:[#allocation8 + $0x10] sm:$0xff] (!%p2444_p7)  }
  0xae   : > { %2650 = vmatprep.mubr.bf16.mxu0 (!%p2444_p7), %v3021_v4  ;;  %2658 = vmatprep.mubr.bf16.mxu1 (!%p2444_p7), %v3022_v5  ;;  %v3024_v11 = vld [vmem:[#allocation8 + $0x28] sm:$0xff] (!%p2444_p7)   ;;  %v3026_v13 = vld [vmem:[#allocation8 + $0x30] sm:$0xff] (!%p2444_p7)   ;;  %v3027_v14 = vld [vmem:[#allocation8 + $0x18] sm:$0xff] (!%p2444_p7)  }
  0xaf   : > { %v3028_v15 = vld [vmem:[#allocation8 + $0x38] sm:$0xff] (!%p2444_p7)   ;;  %v3739_v16 = vld [vmem:[%s4283_s3] ss:$0 sm:$0xff] (!%p2444_p7) }
  0xb0   : > { %2637 = vmatpush3.bf16.msra.mxu0 (!%p2444_p7), %v3014_v1  ;;  %2867 = vmatpush3.bf16.msra.mxu1 (!%p2444_p7), %v3014_v1 }
  0xb1   : > { %2638 = vmatprep.subr.bf16.mxu0 (!%p2444_p7), %v3015_v2  ;;  %2860 = vmatprep.subr.bf16.mxu1 (!%p2444_p7), %v3015_v2 }
  0xb4   : > { %2639 = vmatpush3.bf16.msra.mxu0 %v3015_v2  ;;  %2868 = vmatpush3.bf16.msra.mxu1 %v3015_v2 }
  0xb5   : > { %2640 = vmatprep.subr.bf16.mxu0 %v3016_v3  ;;  %2861 = vmatprep.subr.bf16.mxu1 %v3016_v3 }
  0xb8   : > { %2641 = vmatpush3.bf16.msra.mxu0 %v3016_v3  ;;  %2869 = vmatpush3.bf16.msra.mxu1 %v3016_v3 }
  0xb9   : > { %2642 = vmatprep.subr.bf16.mxu0 %v3017_v6  ;;  %2862 = vmatprep.subr.bf16.mxu1 %v3017_v6 }
  0xbc   : > { %2643 = vmatpush3.bf16.msra.mxu0 %v3017_v6  ;;  %2870 = vmatpush3.bf16.msra.mxu1 %v3017_v6 }
  0xbd   : > { %2644 = vmatprep.subr.bf16.mxu0 %v3018_v7  ;;  %2863 = vmatprep.subr.bf16.mxu1 %v3018_v7 }
  0xc0   : > { %2645 = vmatpush3.bf16.msra.mxu0 %v3018_v7  ;;  %2871 = vmatpush3.bf16.msra.mxu1 %v3018_v7 }
  0xc1   : > { %2646 = vmatprep.subr.bf16.mxu0 %v3019_v8  ;;  %2864 = vmatprep.subr.bf16.mxu1 %v3019_v8 }
  0xc4   : > { %2647 = vmatpush3.bf16.msra.mxu0 %v3019_v8  ;;  %2872 = vmatpush3.bf16.msra.mxu1 %v3019_v8 }
  0xc5   : > { %2648 = vmatprep.subr.bf16.mxu0 %v3020_v9  ;;  %2865 = vmatprep.subr.bf16.mxu1 %v3020_v9 }
  0xc8   : > { %2649 = vmatpush3.bf16.msra.mxu0 %v3020_v9  ;;  %2873 = vmatpush3.bf16.msra.mxu1 %v3020_v9 }
  0xcb   : > { %2651 = vmatmul.mubr.bf16.vlgmr.msra.gmra.mrb[0].mxu0 %v3023_v10  ;;  %2659 = vmatmul.mubr.bf16.vlgmr.msra.gmra.mrb[0].mxu1 %v3024_v11 }
  0xcc   : > { %2654 = vmatprep.mubr.bf16.mxu0 %v3025_v12  ;;  %2662 = vmatprep.mubr.bf16.mxu1 %v3026_v13 }
  0xd3   : > { %2655 = vmatmul.mubr.bf16.gmra.mrb[4].mxu0 %v3027_v14  ;;  %2663 = vmatmul.mubr.bf16.gmra.mrb[4].mxu1 %v3028_v15 }
 0x19e   : > { %v2652_v17 = vpop.f32.mrb[0].mxu0  ;;  %v2660_v18 = vpop.f32.mrb[0].mxu1 }
 0x19f   : > { %v569_v19 = vadd.f32 %v2652_v17, %v3739_v16  ;;  %v601_v20 = vadd.f32 %v2660_v18, %v3739_v16  ;;  %v560_v21 = vpop.f32.mrb[1].mxu0  ;;  %v592_v22 = vpop.f32.mrb[1].mxu1 }
 0x1a0   : > { %v561_v23 = vadd.f32 %v3739_v16, %v560_v21  ;;  %v593_v24 = vadd.f32 %v3739_v16, %v592_v22  ;;  %v2653_v25 = vpop.f32.mrb[2].mxu0  ;;  %v2661_v26 = vpop.f32.mrb[2].mxu1 }
 0x1a1   : > { %v625_v27 = vmax.f32 %v569_v19, 0.0  ;;  %v633_v28 = vmax.f32 %v601_v20, 0.0  ;;  %v572_v29 = vadd.f32 %v2653_v25, %v3739_v16  ;;  %v604_v30 = vadd.f32 %v2661_v26, %v3739_v16  ;;  %v563_v31 = vpop.f32.mrb[3].mxu0  ;;  %v595_v32 = vpop.f32.mrb[3].mxu1 }
 0x1a2   : > { %v623_v33 = vmax.f32 %v561_v23, 0.0  ;;  %v631_v34 = vmax.f32 %v593_v24, 0.0  ;;  %v564_v35 = vadd.f32 %v3739_v16, %v563_v31  ;;  %v596_v36 = vadd.f32 %v3739_v16, %v595_v32 }
 0x1a3   : > { %v661_v37 = vmul.f32 0.1, %v625_v27  ;;  %v669_v38 = vmul.f32 0.1, %v633_v28  ;;  %v626_v39 = vmax.f32 %v572_v29, 0.0  ;;  %v634_v40 = vmax.f32 %v604_v30, 0.0 }
 0x1a4   : > { %v659_v41 = vmul.f32 0.1, %v623_v33  ;;  %v667_v42 = vmul.f32 0.1, %v631_v34  ;;  %v624_v43 = vmax.f32 %v564_v35, 0.0  ;;  %v632_v44 = vmax.f32 %v596_v36, 0.0 }
 0x1a5   : > { %678 = vst [vmem:[#allocation4 + $0x10] sm:$0xff] %v661_v37  ;;  %686 = vst [vmem:[#allocation4 + $0x50] sm:$0xff] %v669_v38  ;;  %v640_v45 = vpack.c.bf16 %v626_v39, %v625_v27  ;;  %v662_v46 = vmul.f32 0.1, %v626_v39  ;;  %v644_v47 = vpack.c.bf16 %v634_v40, %v633_v28  ;;  %v670_v48 = vmul.f32 0.1, %v634_v40 }
 0x1a6   : > { %676 = vst [vmem:[#allocation4] sm:$0xff] %v659_v41  ;;  %684 = vst [vmem:[#allocation4 + $0x40] sm:$0xff] %v667_v42  ;;  %v639_v49 = vpack.c.bf16 %v624_v43, %v623_v33  ;;  %v660_v50 = vmul.f32 0.1, %v624_v43  ;;  %v643_v51 = vpack.c.bf16 %v632_v44, %v631_v34  ;;  %v668_v52 = vmul.f32 0.1, %v632_v44 }
 0x1a7   : > { %v2656_v53 = vpop.f32.mrb[4].mxu0  ;;  %v2664_v54 = vpop.f32.mrb[4].mxu1  ;;  %652 = vst [vmem:[#allocation2 + $0x8] sm:$0xff] %v640_v45  ;;  %679 = vst [vmem:[#allocation4 + $0x18] sm:$0xff] %v662_v46 }
 0x1a8   : > { %656 = vst [vmem:[#allocation2 + $0x28] sm:$0xff] %v644_v47  ;;  %687 = vst [vmem:[#allocation4 + $0x58] sm:$0xff] %v670_v48  ;;  %v585_v55 = vadd.f32 %v2656_v53, %v3739_v16  ;;  %v617_v56 = vadd.f32 %v2664_v54, %v3739_v16  ;;  %v576_v57 = vpop.f32.mrb[5].mxu0  ;;  %v608_v58 = vpop.f32.mrb[5].mxu1 }
 0x1a9   : > { %651 = vst [vmem:[#allocation2] sm:$0xff] %v639_v49  ;;  %677 = vst [vmem:[#allocation4 + $0x8] sm:$0xff] %v660_v50  ;;  %v577_v59 = vadd.f32 %v3739_v16, %v576_v57  ;;  %v609_v60 = vadd.f32 %v3739_v16, %v608_v58  ;;  %v2657_v61 = vpop.f32.mrb[6].mxu0  ;;  %v2665_v62 = vpop.f32.mrb[6].mxu1 }
 0x1aa   : > { %655 = vst [vmem:[#allocation2 + $0x20] sm:$0xff] %v643_v51  ;;  %685 = vst [vmem:[#allocation4 + $0x48] sm:$0xff] %v668_v52  ;;  %v629_v63 = vmax.f32 %v585_v55, 0.0  ;;  %v637_v0 = vmax.f32 %v617_v56, 0.0  ;;  %v588_v1 = vadd.f32 %v2657_v61, %v3739_v16  ;;  %v620_v2 = vadd.f32 %v2665_v62, %v3739_v16  ;;  %v579_v3 = vpop.f32.mrb[7].mxu0  ;;  %v611_v4 = vpop.f32.mrb[7].mxu1 }
 0x1ab   : > { %v627_v5 = vmax.f32 %v577_v59, 0.0  ;;  %v635_v6 = vmax.f32 %v609_v60, 0.0  ;;  %v580_v7 = vadd.f32 %v3739_v16, %v579_v3  ;;  %v612_v8 = vadd.f32 %v3739_v16, %v611_v4 }
 0x1ac   : > { %v665_v9 = vmul.f32 0.1, %v629_v63  ;;  %v673_v10 = vmul.f32 0.1, %v637_v0  ;;  %v630_v11 = vmax.f32 %v588_v1, 0.0  ;;  %v638_v12 = vmax.f32 %v620_v2, 0.0 }
 0x1ad   : > { %v663_v13 = vmul.f32 0.1, %v627_v5  ;;  %v671_v14 = vmul.f32 0.1, %v635_v6  ;;  %v628_v15 = vmax.f32 %v580_v7, 0.0  ;;  %v636_v17 = vmax.f32 %v612_v8, 0.0 }
 0x1ae   : > { %682 = vst [vmem:[#allocation4 + $0x30] sm:$0xff] %v665_v9  ;;  %690 = vst [vmem:[#allocation4 + $0x70] sm:$0xff] %v673_v10  ;;  %v642_v18 = vpack.c.bf16 %v630_v11, %v629_v63  ;;  %v666_v19 = vmul.f32 0.1, %v630_v11  ;;  %v646_v20 = vpack.c.bf16 %v638_v12, %v637_v0  ;;  %v674_v21 = vmul.f32 0.1, %v638_v12 }
 0x1af   : > { %680 = vst [vmem:[#allocation4 + $0x20] sm:$0xff] %v663_v13  ;;  %688 = vst [vmem:[#allocation4 + $0x60] sm:$0xff] %v671_v14  ;;  %v641_v22 = vpack.c.bf16 %v628_v15, %v627_v5  ;;  %v664_v23 = vmul.f32 0.1, %v628_v15  ;;  %v645_v24 = vpack.c.bf16 %v636_v17, %v635_v6  ;;  %v672_v16 = vmul.f32 0.1, %v636_v17 }
 0x1b0   : > { %654 = vst [vmem:[#allocation2 + $0x18] sm:$0xff] %v642_v18  ;;  %683 = vst [vmem:[#allocation4 + $0x38] sm:$0xff] %v666_v19 }
 0x1b1   : > { %658 = vst [vmem:[#allocation2 + $0x38] sm:$0xff] %v646_v20  ;;  %691 = vst [vmem:[#allocation4 + $0x78] sm:$0xff] %v674_v21 }
 0x1b2   : > { %653 = vst [vmem:[#allocation2 + $0x10] sm:$0xff] %v641_v22  ;;  %681 = vst [vmem:[#allocation4 + $0x28] sm:$0xff] %v664_v23 }
 0x1b3   : > { %657 = vst [vmem:[#allocation2 + $0x30] sm:$0xff] %v645_v24  ;;  %689 = vst [vmem:[#allocation4 + $0x68] sm:$0xff] %v672_v16 }
 0x1b4 PF: > { %p692_p11 = scmp.lt.s32.totalorder %s3431_s27, 0  ;;  %s693_s21 = ssub.s32 0, %s3431_s27 }
 0x1b5   : > { %s2462_s23 = smin.u32 %s3431_s27, %s693_s21  ;;  %p705_p2 = scmp.gt.s32.totalorder %s3431_s27, 0 }
 0x1b6   : > { %s695_s11 = sand.u32 1, %s2462_s23  }
 0x1b7   : > { %s696_s19 = ssub.s32 0, %s695_s11 }
 0x1b8   : > { %s4323_s19 = smov (!%p692_p11, %s696_s19), %s695_s11 }
 0x1b9   : > { %p2464_p13 = scmp.lt.s32.totalorder %s4323_s19, 0  ;;  %s702_s13 = sadd.s32 2, %s4323_s19 }
 0x1bb   : > { %s4325_s13 = smov (!%p2464_p13, %s702_s13), %s4323_s19 }
 0x1bc   : > { %p704_p6 = scmp.eq.s32.totalorder %s4325_s13, 1 }
 0x1be   : > { %p706_p9 = pnand %p705_p2, %p704_p6 }
 0x1bf   : > { %v726_v25 = vld [vmem:[#allocation2] sm:$0xff] (!%p706_p9)  ;;  %v727_v26 = vld [vmem:[#allocation2 + $0x8] sm:$0xff] (!%p706_p9)  ;;  %v728_v28 = vld [vmem:[#allocation2 + $0x10] sm:$0xff] (!%p706_p9)  ;;  %p2481_p0 = scmp.ne.s32.totalorder (!%p706_p9), %s3431_s27, 2 }
 0x1c0   : > { %709 = sbr.rel (%p706_p9) target bundleno = 1501 (0x5dd), region = 76  ;;  %2666 = vmatprep.subr.bf16.mxu0 (!%p706_p9), %v726_v25  ;;  %v3029_v27 = vld [vmem:[#allocation5] sm:$0xff] (!%p706_p9)   ;;  %v729_v29 = vld [vmem:[#allocation2 + $0x18] sm:$0xff] (!%p706_p9)  ;;  %v3038_v32 = vld [vmem:[%s3725_s16 + $0x8] sm:$0xff] (!%p706_p9)  }
 0x1c1   : > { %2667 = vmatpush3.bf16.msra.mxu0 (!%p706_p9), %v726_v25  ;;  %2682 = vmatprep.mubr.bf16.mxu0 (!%p706_p9), %v3029_v27  ;;  %v730_v30 = vld [vmem:[#allocation2 + $0x20] sm:$0xff] (!%p706_p9)  ;;  %v3039_v33 = vld [vmem:[%s3725_s16 + $0x10] sm:$0xff] (!%p706_p9)   ;;  %v731_v34 = vld [vmem:[#allocation2 + $0x28] sm:$0xff] (!%p706_p9) }
 0x1c2   : > { %2668 = vmatprep.subr.bf16.mxu0 (!%p706_p9), %v727_v26  ;;  %v3037_v31 = vld [vmem:[%s3725_s16] sm:$0xff] (!%p706_p9)   ;;  %v3040_v35 = vld [vmem:[%s3725_s16 + $0x18] sm:$0xff] (!%p706_p9)   ;;  %v732_v36 = vld [vmem:[#allocation2 + $0x30] sm:$0xff] (!%p706_p9) }
 0x1c3   : > { %2698 = vmatprep.subr.bf16.mxu1 (!%p706_p9), %v3037_v31  ;;  %v3041_v37 = vld [vmem:[%s3725_s16 + $0x20] sm:$0xff] (!%p706_p9)   ;;  %v733_v38 = vld [vmem:[#allocation2 + $0x38] sm:$0xff] (!%p706_p9)  ;;  %v3042_v39 = vld [vmem:[%s3725_s16 + $0x28] sm:$0xff] (!%p706_p9)  }
 0x1c4   : > { %2699 = vmatpush3.bf16.msra.mxu1 (!%p706_p9), %v3037_v31  ;;  %v3030_v40 = vld [vmem:[#allocation5 + $0x8] sm:$0xff] (!%p706_p9)   ;;  %v3031_v41 = vld [vmem:[#allocation5 + $0x10] sm:$0xff] (!%p706_p9)   ;;  %v3032_v42 = vld [vmem:[#allocation5 + $0x18] sm:$0xff] (!%p706_p9)  }
 0x1c5   : > { %2669 = vmatpush3.bf16.msra.mxu0 (!%p706_p9), %v727_v26  ;;  %2700 = vmatprep.subr.bf16.mxu1 (!%p706_p9), %v3038_v32  ;;  %v3033_v43 = vld [vmem:[#allocation5 + $0x20] sm:$0xff] (!%p706_p9)   ;;  %v3034_v44 = vld [vmem:[#allocation5 + $0x28] sm:$0xff] (!%p706_p9)   ;;  %v3035_v45 = vld [vmem:[#allocation5 + $0x30] sm:$0xff] (!%p706_p9)  }
 0x1c6   : > { %2670 = vmatprep.subr.bf16.mxu0 (!%p706_p9), %v728_v28  ;;  %v3036_v46 = vld [vmem:[#allocation5 + $0x38] sm:$0xff] (!%p706_p9)   ;;  %v3043_v47 = vld [vmem:[%s3725_s16 + $0x30] sm:$0xff] (!%p706_p9)   ;;  %v735_v53 = vld [vmem:[#allocation4] sm:$0xff] (!%p706_p9) }
 0x1c7   : > { %v3044_v48 = vld [vmem:[%s3725_s16 + $0x38] sm:$0xff]   ;;  %v737_v49 = vld [vmem:[#allocation4 + $0x10] sm:$0xff]  ;;  %v736_v54 = vld [vmem:[#allocation4 + $0x8] sm:$0xff] }
 0x1c8   : > { %2701 = vmatpush3.bf16.msra.mxu1 %v3038_v32  ;;  %v738_v51 = vld [vmem:[#allocation4 + $0x18] sm:$0xff]  ;;  %v741_v63 = vld [vmem:[#allocation4 + $0x30] sm:$0xff]  ;;  %v739_v3 = vld [vmem:[#allocation4 + $0x20] sm:$0xff] }
 0x1c9   : > { %2671 = vmatpush3.bf16.msra.mxu0 %v728_v28  ;;  %2702 = vmatprep.subr.bf16.mxu1 %v3039_v33  ;;  %v742_v1 = vld [vmem:[#allocation4 + $0x38] sm:$0xff]  ;;  %v740_v4 = vld [vmem:[#allocation4 + $0x28] sm:$0xff]  ;;  %v745_v13 = vld [vmem:[#allocation4 + $0x50] sm:$0xff] }
 0x1ca   : > { %2672 = vmatprep.subr.bf16.mxu0 %v729_v29  ;;  %v746_v15 = vld [vmem:[#allocation4 + $0x58] sm:$0xff]  ;;  %v743_v18 = vld [vmem:[#allocation4 + $0x40] sm:$0xff]  ;;  %v744_v19 = vld [vmem:[#allocation4 + $0x48] sm:$0xff] }
 0x1cb   : > { %v749_v27 = vld [vmem:[#allocation4 + $0x70] sm:$0xff]  ;;  %v747_v31 = vld [vmem:[#allocation4 + $0x60] sm:$0xff]  ;;  %v748_v32 = vld [vmem:[#allocation4 + $0x68] sm:$0xff] }
 0x1cc   : > { %2703 = vmatpush3.bf16.msra.mxu1 %v3039_v33 }
 0x1cd   : > { %2673 = vmatpush3.bf16.msra.mxu0 %v729_v29  ;;  %2704 = vmatprep.subr.bf16.mxu1 %v3040_v35  ;;  %v750_v29 = vld [vmem:[#allocation4 + $0x78] sm:$0xff] }
 0x1ce   : > { %2674 = vmatprep.subr.bf16.mxu0 %v730_v30 }
 0x1d0   : > { %2705 = vmatpush3.bf16.msra.mxu1 %v3040_v35 }
 0x1d1   : > { %2675 = vmatpush3.bf16.msra.mxu0 %v730_v30  ;;  %2706 = vmatprep.subr.bf16.mxu1 %v3041_v37 }
 0x1d2   : > { %2676 = vmatprep.subr.bf16.mxu0 %v731_v34 }
 0x1d4   : > { %2707 = vmatpush3.bf16.msra.mxu1 %v3041_v37 }
 0x1d5   : > { %2677 = vmatpush3.bf16.msra.mxu0 %v731_v34  ;;  %2708 = vmatprep.subr.bf16.mxu1 %v3042_v39 }
 0x1d6   : > { %2678 = vmatprep.subr.bf16.mxu0 %v732_v36 }
 0x1d8   : > { %2709 = vmatpush3.bf16.msra.mxu1 %v3042_v39 }
 0x1d9   : > { %2679 = vmatpush3.bf16.msra.mxu0 %v732_v36  ;;  %2710 = vmatprep.subr.bf16.mxu1 %v3043_v47 }
 0x1da   : > { %2680 = vmatprep.subr.bf16.mxu0 %v733_v38 }
 0x1dc   : > { %2711 = vmatpush3.bf16.msra.mxu1 %v3043_v47 }
 0x1dd   : > { %2681 = vmatpush3.bf16.msra.mxu0 %v733_v38  ;;  %2712 = vmatprep.subr.bf16.mxu1 %v3044_v48 }
 0x1e0   : > { %2683 = vmatmul.mubr.bf16.vlgmr.msra.gmra.mrb[0].mxu0 %v3030_v40  ;;  %2713 = vmatpush3.bf16.msra.mxu1 %v3044_v48 }
 0x1e1   : > { %2686 = vmatprep.mubr.bf16.mxu0 %v3031_v41 }
 0x1e8   : > { %2687 = vmatmul.mubr.bf16.gmra.mrb[4].mxu0 %v3032_v42 }
 0x1e9   : > { %2690 = vmatprep.mubr.bf16.mxu0 %v3033_v43 }
 0x1f0   : > { %2691 = vmatmul.mubr.bf16.gmra.mrb[8].mxu0 %v3034_v44 }
 0x1f1   : > { %2694 = vmatprep.mubr.bf16.mxu0 %v3035_v45 }
 0x1f8   : > { %2695 = vmatmul.mubr.bf16.gmra.mrb[12].mxu0 %v3036_v46 }
 0x2b3   : > { %v2684_v50 = vpop.f32.mrb[0].mxu0 }
 0x2b4   : > { %v833_v52 = vpop.f32.mrb[1].mxu0  ;;  %v842_v56 = vadd.f32 %v2684_v50, %v737_v49 }
 0x2b5   : > { %v2685_v55 = vpop.f32.mrb[2].mxu0  ;;  %v834_v59 = vadd.f32 %v833_v52, %v735_v53 }
 0x2b6   : > { %v845_v57 = vadd.f32 %v2685_v55, %v738_v51  ;;  %v836_v58 = vpop.f32.mrb[3].mxu0 }
 0x2b7   : > { %v837_v60 = vadd.f32 %v836_v58, %v736_v54 }
 0x2b8   : > { %v897_v61 = vpack.c.bf16 %v845_v57, %v842_v56 }
 0x2b9   : > { %v896_v62 = vpack.c.bf16 %v837_v60, %v834_v59 }
 0x2bb   : > { %v2688_v0 = vpop.f32.mrb[4].mxu0  ;;  %2714 = vmatprep.mubr.bf16.mxu1 %v896_v62 }
 0x2bc   : > { %v849_v2 = vpop.f32.mrb[5].mxu0  ;;  %2715 = vmatmul.mubr.bf16.vlgmr.msra.gmra.mrb[0].mxu1 %v897_v61  ;;  %v858_v6 = vadd.f32 %v2688_v0, %v741_v63 }
 0x2bd   : > { %v2689_v5 = vpop.f32.mrb[6].mxu0  ;;  %v850_v9 = vadd.f32 %v849_v2, %v739_v3 }
 0x2be   : > { %v861_v7 = vadd.f32 %v2689_v5, %v742_v1  ;;  %v852_v8 = vpop.f32.mrb[7].mxu0 }
 0x2bf   : > { %v853_v10 = vadd.f32 %v852_v8, %v740_v4 }
 0x2c0   : > { %v899_v11 = vpack.c.bf16 %v861_v7, %v858_v6 }
 0x2c1   : > { %v898_v12 = vpack.c.bf16 %v853_v10, %v850_v9 }
 0x2c3   : > { %v2692_v14 = vpop.f32.mrb[8].mxu0  ;;  %2718 = vmatprep.mubr.bf16.mxu1 %v898_v12 }
 0x2c4   : > { %v865_v17 = vpop.f32.mrb[9].mxu0  ;;  %2719 = vmatmul.mubr.bf16.gmra.mrb[4].mxu1 %v899_v11  ;;  %v874_v21 = vadd.f32 %v2692_v14, %v745_v13 }
 0x2c5   : > { %v2693_v20 = vpop.f32.mrb[10].mxu0  ;;  %v866_v24 = vadd.f32 %v865_v17, %v743_v18  ;;  %v3045_v18 = vld [vmem:[#allocation13] sm:$0xff] (!%p2481_p0)  }
 0x2c6   : > { %v877_v22 = vadd.f32 %v2693_v20, %v746_v15  ;;  %v868_v23 = vpop.f32.mrb[11].mxu0  ;;  %2730 = vmatprep.subr.bf16.mxu0 (!%p2481_p0), %v3045_v18  ;;  %2874 = vmatprep.subr.bf16.mxu1 (!%p2481_p0), %v3045_v18  ;;  %v3047_v20 = vld [vmem:[#allocation13 + $0x10] sm:$0xff] (!%p2481_p0)  }
 0x2c7   : > { %v869_v16 = vadd.f32 %v868_v23, %v744_v19  ;;  %v3046_v19 = vld [vmem:[#allocation13 + $0x8] sm:$0xff] (!%p2481_p0)   ;;  %2731 = vmatpush3.bf16.msra.mxu0 (!%p2481_p0), %v3045_v18  ;;  %2882 = vmatpush3.bf16.msra.mxu1 (!%p2481_p0), %v3045_v18 }
 0x2c8   : > { %v901_v25 = vpack.c.bf16 %v877_v22, %v874_v21  ;;  %2732 = vmatprep.subr.bf16.mxu0 (!%p2481_p0), %v3046_v19  ;;  %2875 = vmatprep.subr.bf16.mxu1 (!%p2481_p0), %v3046_v19  ;;  %v3048_v21 = vld [vmem:[#allocation13 + $0x18] sm:$0xff] (!%p2481_p0)   ;;  %v3049_v22 = vld [vmem:[#allocation13 + $0x20] sm:$0xff] (!%p2481_p0)   ;;  %v3050_v23 = vld [vmem:[#allocation13 + $0x28] sm:$0xff] (!%p2481_p0)  }
 0x2c9   : > { %v900_v26 = vpack.c.bf16 %v869_v16, %v866_v24  ;;  %v3051_v24 = vld [vmem:[#allocation13 + $0x30] sm:$0xff] (!%p2481_p0)   ;;  %v3052_v16 = vld [vmem:[#allocation13 + $0x38] sm:$0xff] (!%p2481_p0)  }
 0x2cb   : > { %v2696_v28 = vpop.f32.mrb[12].mxu0  ;;  %2722 = vmatprep.mubr.bf16.mxu1 %v900_v26  ;;  %2733 = vmatpush3.bf16.msra.mxu0 (!%p2481_p0), %v3046_v19 }
 0x2cc   : > { %v881_v30 = vpop.f32.mrb[13].mxu0  ;;  %2723 = vmatmul.mubr.bf16.gmra.mrb[8].mxu1 %v901_v25  ;;  %v890_v34 = vadd.f32 %v2696_v28, %v749_v27  ;;  %2734 = vmatprep.subr.bf16.mxu0 (!%p2481_p0), %v3047_v20  ;;  %v1273_v25 = vlaneseq (!%p2481_p0)  ;;  %v2482_v27 = vld [vmem:[%s4286_s6] ss:$0 sm:$0xff] (!%p2481_p0) }
 0x2cd   : > { %v2697_v33 = vpop.f32.mrb[14].mxu0  ;;  %v882_v37 = vadd.f32 %v881_v30, %v747_v31  ;;  %2883 = vmatpush3.bf16.msra.mxu1 (!%p2481_p0), %v3046_v19 }
 0x2ce   : > { %v893_v35 = vadd.f32 %v2697_v33, %v750_v29  ;;  %v884_v36 = vpop.f32.mrb[15].mxu0  ;;  %2876 = vmatprep.subr.bf16.mxu1 (!%p2481_p0), %v3047_v20  ;;  %v3787_v26 = vand.u32 (!%p2481_p0), 127, %v1273_v25 }
 0x2cf   : > { %v885_v38 = vadd.f32 %v884_v36, %v748_v32  ;;  %2735 = vmatpush3.bf16.msra.mxu0 (!%p2481_p0), %v3047_v20 }
 0x2d0   : > { %v903_v39 = vpack.c.bf16 %v893_v35, %v890_v34  ;;  %2736 = vmatprep.subr.bf16.mxu0 (!%p2481_p0), %v3048_v21  ;;  %vm1275_vm0 = vcmp.lt.s32.totalorder (!%p2481_p0), %v3787_v26, 8 }
 0x2d1   : > { %v902_v40 = vpack.c.bf16 %v885_v38, %v882_v37  ;;  %2884 = vmatpush3.bf16.msra.mxu1 (!%p2481_p0), %v3047_v20 }
 0x2d2   : > { %2877 = vmatprep.subr.bf16.mxu1 (!%p2481_p0), %v3048_v21 }
 0x2d3   : > { %2726 = vmatprep.mubr.bf16.mxu1 %v902_v40  ;;  %2737 = vmatpush3.bf16.msra.mxu0 (!%p2481_p0), %v3048_v21 }
 0x2d4   : > { %2727 = vmatmul.mubr.bf16.gmra.mrb[12].mxu1 %v903_v39  ;;  %2738 = vmatprep.subr.bf16.mxu0 (!%p2481_p0), %v3049_v22 }
 0x2d5   : > { %2885 = vmatpush3.bf16.msra.mxu1 (!%p2481_p0), %v3048_v21 }
 0x2d6   : > { %2878 = vmatprep.subr.bf16.mxu1 (!%p2481_p0), %v3049_v22 }
 0x2d7   : > { %2739 = vmatpush3.bf16.msra.mxu0 (!%p2481_p0), %v3049_v22 }
 0x2d8   : > { %2740 = vmatprep.subr.bf16.mxu0 (!%p2481_p0), %v3050_v23 }
 0x2d9   : > { %2886 = vmatpush3.bf16.msra.mxu1 (!%p2481_p0), %v3049_v22 }
 0x2da   : > { %2879 = vmatprep.subr.bf16.mxu1 (!%p2481_p0), %v3050_v23 }
 0x2db   : > { %2741 = vmatpush3.bf16.msra.mxu0 (!%p2481_p0), %v3050_v23 }
 0x2dc   : > { %2742 = vmatprep.subr.bf16.mxu0 (!%p2481_p0), %v3051_v24 }
 0x2dd   : > { %2887 = vmatpush3.bf16.msra.mxu1 (!%p2481_p0), %v3050_v23 }
 0x2de   : > { %2880 = vmatprep.subr.bf16.mxu1 (!%p2481_p0), %v3051_v24 }
 0x2df   : > { %2743 = vmatpush3.bf16.msra.mxu0 (!%p2481_p0), %v3051_v24 }
 0x2e0   : > { %2744 = vmatprep.subr.bf16.mxu0 (!%p2481_p0), %v3052_v16 }
 0x2e1   : > { %2888 = vmatpush3.bf16.msra.mxu1 (!%p2481_p0), %v3051_v24 }
 0x2e2   : > { %2881 = vmatprep.subr.bf16.mxu1 (!%p2481_p0), %v3052_v16 }
 0x2e3   : > { %2745 = vmatpush3.bf16.msra.mxu0 (!%p2481_p0), %v3052_v16 }
 0x2e5   : > { %2889 = vmatpush3.bf16.msra.mxu1 (!%p2481_p0), %v3052_v16 }
 0x38f   : > { %v2716_v41 = vpop.f32.mrb[0].mxu1 }
 0x390   : > { %v1002_v42 = vpop.f32.mrb[1].mxu1  ;;  %v1067_v44 = vmax.f32 %v2716_v41, 0.0 }
 0x391   : > { %v2717_v43 = vpop.f32.mrb[2].mxu1  ;;  %v1065_v47 = vmax.f32 %v1002_v42, 0.0 }
 0x392   : > { %v1068_v45 = vmax.f32 %v2717_v43, 0.0  ;;  %v1005_v46 = vpop.f32.mrb[3].mxu1 }
 0x393   : > { %v1066_v48 = vmax.f32 %v1005_v46, 0.0 }
 0x394   : > { %v3774_v49 = vpack.c.bf16 %v1068_v45, %v1067_v44 }
 0x395   : > { %v1081_v50 = vpack.c.bf16 %v1066_v48, %v1065_v47 }
 0x396   : > { %1094 = vst [vmem:[#allocation3 + $0x8] sm:$0xff] %v3774_v49 }
 0x397   : > { %1093 = vst [vmem:[#allocation3] sm:$0xff] %v1081_v50  ;;  %v2720_v51 = vpop.f32.mrb[4].mxu1  ;;  %2746 = vmatprep.mubr.bf16.mxu0 (!%p2481_p0), %v1081_v50 }
 0x398   : > { %v1018_v52 = vpop.f32.mrb[5].mxu1  ;;  %v1071_v54 = vmax.f32 %v2720_v51, 0.0  ;;  %2747 = vmatmul.mubr.bf16.vlgmr.msra.gmra.mrb[0].mxu0 (!%p2481_p0), %v3774_v49 }
 0x399   : > { %v2721_v53 = vpop.f32.mrb[6].mxu1  ;;  %v1069_v57 = vmax.f32 %v1018_v52, 0.0 }
 0x39a   : > { %v1072_v55 = vmax.f32 %v2721_v53, 0.0  ;;  %v1021_v56 = vpop.f32.mrb[7].mxu1 }
 0x39b   : > { %v1070_v58 = vmax.f32 %v1021_v56, 0.0 }
 0x39c   : > { %v3777_v59 = vpack.c.bf16 %v1072_v55, %v1071_v54 }
 0x39d   : > { %v3779_v60 = vpack.c.bf16 %v1070_v58, %v1069_v57 }
 0x39e   : > { %1096 = vst [vmem:[#allocation3 + $0x18] sm:$0xff] %v3777_v59 }
 0x39f   : > { %1095 = vst [vmem:[#allocation3 + $0x10] sm:$0xff] %v3779_v60  ;;  %v2724_v61 = vpop.f32.mrb[8].mxu1  ;;  %2750 = vmatprep.mubr.bf16.mxu0 (!%p2481_p0), %v3779_v60 }
 0x3a0   : > { %v1034_v62 = vpop.f32.mrb[9].mxu1  ;;  %v1075_v0 = vmax.f32 %v2724_v61, 0.0  ;;  %2751 = vmatmul.mubr.bf16.gmra.mrb[4].mxu0 (!%p2481_p0), %v3777_v59 }
 0x3a1   : > { %v2725_v63 = vpop.f32.mrb[10].mxu1  ;;  %v1073_v3 = vmax.f32 %v1034_v62, 0.0 }
 0x3a2   : > { %v1076_v1 = vmax.f32 %v2725_v63, 0.0  ;;  %v1037_v2 = vpop.f32.mrb[11].mxu1 }
 0x3a3   : > { %v1074_v4 = vmax.f32 %v1037_v2, 0.0 }
 0x3a4   : > { %v1086_v5 = vpack.c.bf16 %v1076_v1, %v1075_v0 }
 0x3a5   : > { %v1085_v6 = vpack.c.bf16 %v1074_v4, %v1073_v3 }
 0x3a6   : > { %1098 = vst [vmem:[#allocation3 + $0x28] sm:$0xff] %v1086_v5 }
 0x3a7   : > { %1097 = vst [vmem:[#allocation3 + $0x20] sm:$0xff] %v1085_v6  ;;  %v2728_v7 = vpop.f32.mrb[12].mxu1  ;;  %2754 = vmatprep.mubr.bf16.mxu1 (!%p2481_p0), %v1085_v6 }
 0x3a8   : > { %v1050_v8 = vpop.f32.mrb[13].mxu1  ;;  %v1079_v10 = vmax.f32 %v2728_v7, 0.0  ;;  %2755 = vmatmul.mubr.bf16.vlgmr.msra.gmra.mrb[0].mxu1 (!%p2481_p0), %v1086_v5 }
 0x3a9   : > { %v2729_v9 = vpop.f32.mrb[14].mxu1  ;;  %v1077_v13 = vmax.f32 %v1050_v8, 0.0  ;;  %1104 = sbr.rel (%p2481_p0) target bundleno = 1501 (0x5dd), region = 80 }
 0x3aa   : > { %v1080_v11 = vmax.f32 %v2729_v9, 0.0  ;;  %v1053_v12 = vpop.f32.mrb[15].mxu1 }
 0x3ab   : > { %v1078_v14 = vmax.f32 %v1053_v12, 0.0 }
 0x3ac   : > { %v1088_v15 = vpack.c.bf16 %v1080_v11, %v1079_v10 }
 0x3ad   : > { %v1087_v17 = vpack.c.bf16 %v1078_v14, %v1077_v13 }
 0x3ae   : > { %1100 = vst [vmem:[#allocation3 + $0x38] sm:$0xff] %v1088_v15 }
 0x3af   : > { %1099 = vst [vmem:[#allocation3 + $0x30] sm:$0xff] %v1087_v17  ;;  %2758 = vmatprep.mubr.bf16.mxu1 (!%p2481_p0), %v1087_v17 }
 0x3b0   : > { %2759 = vmatmul.mubr.bf16.gmra.mrb[4].mxu1 %v1088_v15 }
 0x46b   : > { %v2748_v28 = vpop.f32.mrb[0].mxu0 }
 0x46c   : > { %v3793_v30 = vadd.f32 %v2748_v28, %v2482_v27  ;;  %v1210_v32 = vpop.f32.mrb[1].mxu0 }
 0x46d   : > { %v2749_v34 = vpop.f32.mrb[2].mxu0  ;;  %v3797_v36 = vadd.f32 %v2482_v27, %v1210_v32 }
 0x46e   : > { %v3799_v37 = vadd.f32 %v2749_v34, %v2482_v27  ;;  %v1213_v38 = vpop.f32.mrb[3].mxu0  ;;  %v1278_v41 = vsel %vm1275_vm0, %v3793_v30, -1e+30 }
 0x46f   : > { %1296 = vmax.xlane.f32.xlu1 %v1278_v41  ;;  %v1276_v45 = vsel %vm1275_vm0, %v3797_v36, -1e+30  ;;  %v3817_v52 = vadd.f32 %v2482_v27, %v1213_v38 }
 0x470   : > { %v1279_v44 = vsel %vm1275_vm0, %v3799_v37, -1e+30 }
 0x471   : > { %v1277_v61 = vsel %vm1275_vm0, %v3817_v52, -1e+30 }
 0x473   : > { %1298 = vmax.xlane.f32.xlu1 %v1279_v44  ;;  %v2752_v46 = vpop.f32.mrb[4].mxu0 }
 0x474   : > { %v1226_v48 = vpop.f32.mrb[5].mxu0  ;;  %v3827_v58 = vadd.f32 %v2752_v46, %v2482_v27 }
 0x475   : > { %v2753_v50 = vpop.f32.mrb[6].mxu0  ;;  %v3843_v0 = vadd.f32 %v2482_v27, %v1226_v48 }
 0x476   : > { %v1229_v56 = vpop.f32.mrb[7].mxu0  ;;  %v3829_v59 = vadd.f32 %v2753_v50, %v2482_v27  ;;  %v1282_v63 = vsel %vm1275_vm0, %v3827_v58, -1e+30 }
 0x477   : > { %v3845_v1 = vadd.f32 %v2482_v27, %v1229_v56  ;;  %v1280_v5 = vsel %vm1275_vm0, %v3843_v0, -1e+30 }
 0x478   : > { %v1283_v62 = vsel %vm1275_vm0, %v3829_v59, -1e+30 }
 0x479   : > { %v1281_v4 = vsel %vm1275_vm0, %v3845_v1, -1e+30 }
 0x47b   : > { %v2756_v29 = vpop.f32.mrb[0].mxu1 }
 0x47c   : > { %v3795_v31 = vadd.f32 %v2756_v29, %v2482_v27  ;;  %v1242_v33 = vpop.f32.mrb[1].mxu1 }
 0x47d   : > { %v2757_v35 = vpop.f32.mrb[2].mxu1  ;;  %v3807_v42 = vadd.f32 %v2482_v27, %v1242_v33 }
 0x47e   : > { %v1245_v39 = vpop.f32.mrb[3].mxu1  ;;  %v1286_v40 = vsel %vm1275_vm0, %v3795_v31, -1e+30  ;;  %v3809_v43 = vadd.f32 %v2757_v35, %v2482_v27 }
 0x47f   : > { %1312 = vmax.xlane.f32.xlu0 %v1286_v40  ;;  %v3819_v53 = vadd.f32 %v2482_v27, %v1245_v39  ;;  %v1284_v55 = vsel %vm1275_vm0, %v3807_v42, -1e+30 }
 0x480   : > { %v1287_v54 = vsel %vm1275_vm0, %v3809_v43, -1e+30 }
 0x481   : > { %1314 = vmax.xlane.f32.xlu1 %v1287_v54  ;;  %v1285_v60 = vsel %vm1275_vm0, %v3819_v53, -1e+30 }
 0x483   : > { %1292 = vmax.xlane.f32.xlu0 %v1276_v45  ;;  %v2760_v47 = vpop.f32.mrb[4].mxu1 }
 0x484   : > { %v1258_v49 = vpop.f32.mrb[5].mxu1  ;;  %v3863_v8 = vadd.f32 %v2760_v47, %v2482_v27 }
 0x485   : > { %v2761_v51 = vpop.f32.mrb[6].mxu1  ;;  %1310 = vmax.xlane.f32.xlu1 %v1285_v60  ;;  %v3847_v2 = vadd.f32 %v2482_v27, %v1258_v49 }
 0x486   : > { %v1261_v57 = vpop.f32.mrb[7].mxu1  ;;  %v3865_v9 = vadd.f32 %v2761_v51, %v2482_v27  ;;  %v1290_v11 = vsel %vm1275_vm0, %v3863_v8, -1e+30 }
 0x487   : > { %1308 = vmax.xlane.f32.xlu0 %v1284_v55  ;;  %v3849_v3 = vadd.f32 %v2482_v27, %v1261_v57  ;;  %v1288_v7 = vsel %vm1275_vm0, %v3847_v2, -1e+30 }
 0x488   : > { %v1291_v10 = vsel %vm1275_vm0, %v3865_v9, -1e+30 }
 0x489   : > { %1306 = vmax.xlane.f32.xlu1 %v1283_v62  ;;  %v1289_v6 = vsel %vm1275_vm0, %v3849_v3, -1e+30 }
 0x48b   : > { %1294 = vmax.xlane.f32.xlu0 %v1277_v61 }
 0x48d   : > { %1302 = vmax.xlane.f32.xlu1 %v1281_v4 }
 0x48f   : > { %1304 = vmax.xlane.f32.xlu0 %v1282_v63 }
 0x491   : > { %1318 = vmax.xlane.f32.xlu1 %v1289_v6 }
 0x493   : > { %1300 = vmax.xlane.f32.xlu0 %v1280_v5 }
 0x495   : > { %1322 = vmax.xlane.f32.xlu1 %v1291_v10 }
 0x497   : > { %1316 = vmax.xlane.f32.xlu0 %v1288_v7 }
 0x49b   : > { %1320 = vmax.xlane.f32.xlu0 %v1290_v11 }
 0x4fc   : > { %v3875_v13 = vpop.xlane.xlu1 %1296 }
 0x4fd   : > { %v1326_v15 = vsub.f32 %v3793_v30, %v3875_v13 }
 0x4ff   : > { %v1344_v17 = vmul.f32 1.442695, %v1326_v15 }
 0x500   : > { %v3881_v19 = vpop.xlane.xlu1 %1298 }
 0x501   : > { %v1327_v21 = vsub.f32 %v3799_v37, %v3881_v19  ;;  %3053 = vpow2.f32 %v1344_v17 }
 0x503   : > { %v1346_v23 = vmul.f32 1.442695, %v1327_v21 }
 0x50b   : > { %v3054_v40 = vpop.eup %3053 }
 0x50c   : > { %v3873_v12 = vpop.xlane.xlu0 %1312  ;;  %v1374_v48 = vsel %vm1275_vm0, %v3054_v40, 0.0 }
 0x50d   : > { %v1334_v14 = vsub.f32 %v3795_v31, %v3873_v12  ;;  %1392 = vadd.xlane.f32.xlu0 %v1374_v48 }
 0x50e   : > { %v3889_v16 = vpop.xlane.xlu1 %1314 }
 0x50f   : > { %v1360_v18 = vmul.f32 1.442695, %v1334_v14  ;;  %v1335_v27 = vsub.f32 %v3809_v43, %v3889_v16 }
 0x510   : > { %v3883_v20 = vpop.xlane.xlu0 %1292 }
 0x511   : > { %v1324_v22 = vsub.f32 %v3797_v36, %v3883_v20  ;;  %3055 = vpow2.f32 %v1360_v18  ;;  %v1362_v29 = vmul.f32 1.442695, %v1335_v27 }
 0x512   : > { %3057 = vpow2.f32 %v1346_v23  ;;  %v3897_v33 = vpop.xlane.xlu1 %1310 }
 0x513   : > { %v1340_v24 = vmul.f32 1.442695, %v1324_v22  ;;  %v1333_v35 = vsub.f32 %v3819_v53, %v3897_v33 }
 0x514   : > { %v3891_v25 = vpop.xlane.xlu0 %1308 }
 0x515   : > { %v1332_v28 = vsub.f32 %v3807_v42, %v3891_v25  ;;  %3059 = vpow2.f32 %v1340_v24  ;;  %v1358_v41 = vmul.f32 1.442695, %v1333_v35 }
 0x516   : > { %3061 = vpow2.f32 %v1362_v29  ;;  %v3905_v44 = vpop.xlane.xlu1 %1306 }
 0x517   : > { %v1356_v32 = vmul.f32 1.442695, %v1332_v28  ;;  %v1331_v46 = vsub.f32 %v3829_v59, %v3905_v44 }
 0x518   : > { %v3899_v34 = vpop.xlane.xlu0 %1294 }
 0x519   : > { %v1325_v38 = vsub.f32 %v3817_v52, %v3899_v34  ;;  %3063 = vpow2.f32 %v1356_v32  ;;  %v1354_v54 = vmul.f32 1.442695, %v1331_v46 }
 0x51a   : > { %v3915_v55 = vpop.xlane.xlu1 %1302 }
 0x51b   : > { %v1342_v39 = vmul.f32 1.442695, %v1325_v38  ;;  %v3056_v49 = vpop.eup %3055  ;;  %v1329_v60 = vsub.f32 %v3845_v1, %v3915_v55 }
 0x51c   : > { %v3907_v45 = vpop.xlane.xlu0 %1304  ;;  %v3058_v50 = vpop.eup %3057  ;;  %v1382_v62 = vsel %vm1275_vm0, %v3056_v49, 0.0 }
 0x51d   : > { %v1330_v47 = vsub.f32 %v3827_v58, %v3907_v45  ;;  %3065 = vpow2.f32 %v1342_v39  ;;  %v1375_v57 = vsel %vm1275_vm0, %v3058_v50, 0.0  ;;  %1408 = vadd.xlane.f32.xlu0 %v1382_v62  ;;  %v1350_v6 = vmul.f32 1.442695, %v1329_v60 }
 0x51e   : > { %3067 = vpow2.f32 %v1358_v41  ;;  %1394 = vadd.xlane.f32.xlu1 %v1375_v57  ;;  %v3927_v7 = vpop.xlane.xlu1 %1318 }
 0x51f   : > { %v1352_v51 = vmul.f32 1.442695, %v1330_v47  ;;  %v3060_v63 = vpop.eup %3059  ;;  %v1337_v14 = vsub.f32 %v3849_v3, %v3927_v7 }
 0x520   : > { %v3917_v56 = vpop.xlane.xlu0 %1300  ;;  %v3062_v4 = vpop.eup %3061  ;;  %v1372_v17 = vsel %vm1275_vm0, %v3060_v63, 0.0 }
 0x521   : > { %v1328_v61 = vsub.f32 %v3843_v0, %v3917_v56  ;;  %3069 = vpow2.f32 %v1352_v51  ;;  %v1383_v11 = vsel %vm1275_vm0, %v3062_v4, 0.0  ;;  %1388 = vadd.xlane.f32.xlu0 %v1372_v17  ;;  %v1366_v23 = vmul.f32 1.442695, %v1337_v14 }
 0x522   : > { %3071 = vpow2.f32 %v1354_v54  ;;  %1410 = vadd.xlane.f32.xlu1 %v1383_v11  ;;  %v3939_v24 = vpop.xlane.xlu1 %1322 }
 0x523   : > { %v1348_v5 = vmul.f32 1.442695, %v1328_v61  ;;  %v3064_v18 = vpop.eup %3063  ;;  %v1339_v28 = vsub.f32 %v3865_v9, %v3939_v24 }
 0x524   : > { %v3929_v10 = vpop.xlane.xlu0 %1316  ;;  %v1380_v32 = vsel %vm1275_vm0, %v3064_v18, 0.0 }
 0x525   : > { %v1336_v15 = vsub.f32 %v3847_v2, %v3929_v10  ;;  %3073 = vpow2.f32 %v1348_v5  ;;  %1404 = vadd.xlane.f32.xlu0 %v1380_v32  ;;  %v1370_v41 = vmul.f32 1.442695, %v1339_v28 }
 0x526   : > { %3075 = vpow2.f32 %v1350_v6 }
 0x527   : > { %v1364_v21 = vmul.f32 1.442695, %v1336_v15  ;;  %v3066_v22 = vpop.eup %3065 }
 0x528   : > { %v3941_v27 = vpop.xlane.xlu0 %1320  ;;  %v1373_v35 = vsel %vm1275_vm0, %v3066_v22, 0.0  ;;  %v3068_v38 = vpop.eup %3067 }
 0x529   : > { %v1338_v29 = vsub.f32 %v3863_v8, %v3941_v27  ;;  %3077 = vpow2.f32 %v1364_v21  ;;  %1390 = vadd.xlane.f32.xlu1 %v1373_v35  ;;  %v1381_v46 = vsel %vm1275_vm0, %v3068_v38, 0.0 }
 0x52a   : > { %3079 = vpow2.f32 %v1366_v23 }
 0x52b   : > { %v1368_v39 = vmul.f32 1.442695, %v1338_v29  ;;  %v3070_v40 = vpop.eup %3069 }
 0x52c   : > { %v1378_v47 = vsel %vm1275_vm0, %v3070_v40, 0.0  ;;  %v3072_v48 = vpop.eup %3071 }
 0x52d   : > { %3081 = vpow2.f32 %v1368_v39  ;;  %1406 = vadd.xlane.f32.xlu1 %v1381_v46  ;;  %1400 = vadd.xlane.f32.xlu0 %v1378_v47  ;;  %v1379_v50 = vsel %vm1275_vm0, %v3072_v48, 0.0 }
 0x52e   : > { %3083 = vpow2.f32 %v1370_v41 }
 0x52f   : > { %v3074_v49 = vpop.eup %3073 }
 0x530   : > { %v1376_v51 = vsel %vm1275_vm0, %v3074_v49, 0.0  ;;  %v3076_v54 = vpop.eup %3075 }
 0x531   : > { %1402 = vadd.xlane.f32.xlu1 %v1379_v50  ;;  %1396 = vadd.xlane.f32.xlu0 %v1376_v51  ;;  %v1377_v60 = vsel %vm1275_vm0, %v3076_v54, 0.0 }
 0x533   : > { %v3078_v57 = vpop.eup %3077 }
 0x534   : > { %v1384_v61 = vsel %vm1275_vm0, %v3078_v57, 0.0  ;;  %v3080_v62 = vpop.eup %3079 }
 0x535   : > { %1398 = vadd.xlane.f32.xlu1 %v1377_v60  ;;  %1412 = vadd.xlane.f32.xlu0 %v1384_v61  ;;  %v1385_v4 = vsel %vm1275_vm0, %v3080_v62, 0.0 }
 0x537   : > { %v3082_v63 = vpop.eup %3081 }
 0x538   : > { %v1386_v5 = vsel %vm1275_vm0, %v3082_v63, 0.0  ;;  %v3084_v6 = vpop.eup %3083 }
 0x539   : > { %1414 = vadd.xlane.f32.xlu1 %v1385_v4  ;;  %1416 = vadd.xlane.f32.xlu0 %v1386_v5  ;;  %v1387_v11 = vsel %vm1275_vm0, %v3084_v6, 0.0 }
 0x53d   : > { %1418 = vadd.xlane.f32.xlu1 %v1387_v11 }
 0x59a   : > { %v1393_v14 = vpop.xlane.xlu0 %1392 }
 0x59b   : > { %3085 = vlog2.f32 %v1393_v14 }
 0x5a5   : > { %v3086_v22 = vpop.eup %3085 }
 0x5a6   : > { %v1425_v23 = vmul.f32 0.6931472, %v3086_v22 }
 0x5a8   : > { %v1454_v26 = vadd.f32 %v1425_v23, %v3875_v13 }
 0x5aa   : > { %v1409_v17 = vpop.xlane.xlu0 %1408  ;;  %v1470_v39 = vsub.f32 %v3793_v30, %v1454_v26 }
 0x5ab   : > { %v1395_v15 = vpop.xlane.xlu1 %1394 }
 0x5ac   : > { %3087 = vlog2.f32 %v1395_v15  ;;  %1487 = vst [vmem:[#allocation14 + $0x10] sm:$0xff] %v1470_v39 }
 0x5ad   : > { %3089 = vlog2.f32 %v1409_v17 }
 0x5ae   : > { %v1389_v21 = vpop.xlane.xlu0 %1388 }
 0x5af   : > { %v1411_v18 = vpop.xlane.xlu1 %1410 }
 0x5b0   : > { %3091 = vlog2.f32 %v1411_v18 }
 0x5b1   : > { %3093 = vlog2.f32 %v1389_v21 }
 0x5b2   : > { %v1405_v29 = vpop.xlane.xlu0 %1404 }
 0x5b6   : > { %v1391_v28 = vpop.xlane.xlu1 %1390  ;;  %v3088_v32 = vpop.eup %3087 }
 0x5b7   : > { %3095 = vlog2.f32 %v1391_v28  ;;  %v3090_v35 = vpop.eup %3089  ;;  %v1427_v38 = vmul.f32 0.6931472, %v3088_v32 }
 0x5b8   : > { %3097 = vlog2.f32 %v1405_v29  ;;  %v1441_v40 = vmul.f32 0.6931472, %v3090_v35 }
 0x5b9   : > { %v1455_v47 = vadd.f32 %v1427_v38, %v3881_v19 }
 0x5ba   : > { %v1407_v41 = vpop.xlane.xlu1 %1406  ;;  %v1401_v46 = vpop.xlane.xlu0 %1400  ;;  %v1462_v49 = vadd.f32 %v1441_v40, %v3873_v12 }
 0x5bb   : > { %3099 = vlog2.f32 %v1407_v41  ;;  %v3092_v48 = vpop.eup %3091  ;;  %v1471_v51 = vsub.f32 %v3799_v37, %v1455_v47 }
 0x5bc   : > { %3101 = vlog2.f32 %v1401_v46  ;;  %v3094_v50 = vpop.eup %3093  ;;  %v1443_v13 = vmul.f32 0.6931472, %v3092_v48  ;;  %v1478_v54 = vsub.f32 %v3795_v31, %v1462_v49 }
 0x5bd   : > { %v1421_v57 = vmul.f32 0.6931472, %v3094_v50  ;;  %1488 = vst [vmem:[#allocation14 + $0x18] sm:$0xff] %v1471_v51 }
 0x5be   : > { %v1403_v60 = vpop.xlane.xlu1 %1402  ;;  %v1397_v30 = vpop.xlane.xlu0 %1396  ;;  %v1463_v61 = vadd.f32 %v1443_v13, %v3889_v16  ;;  %1495 = vst [vmem:[#allocation14 + $0x50] sm:$0xff] %v1478_v54 }
 0x5bf   : > { %3103 = vlog2.f32 %v1403_v60  ;;  %v1452_v19 = vadd.f32 %v1421_v57, %v3883_v20 }
 0x5c0   : > { %3105 = vlog2.f32 %v1397_v30  ;;  %v1479_v12 = vsub.f32 %v3809_v43, %v1463_v61 }
 0x5c1   : > { %v3096_v62 = vpop.eup %3095  ;;  %v1468_v37 = vsub.f32 %v3797_v36, %v1452_v19 }
 0x5c2   : > { %v3098_v63 = vpop.eup %3097  ;;  %v1423_v4 = vmul.f32 0.6931472, %v3096_v62  ;;  %v1399_v5 = vpop.xlane.xlu1 %1398  ;;  %1496 = vst [vmem:[#allocation14 + $0x58] sm:$0xff] %v1479_v12 }
 0x5c3   : > { %v1413_v31 = vpop.xlane.xlu0 %1412  ;;  %v1437_v6 = vmul.f32 0.6931472, %v3098_v63  ;;  %3107 = vlog2.f32 %v1399_v5  ;;  %1485 = vst [vmem:[#allocation14] sm:$0xff] %v1468_v37 }
 0x5c4   : > { %v1453_v16 = vadd.f32 %v1423_v4, %v3899_v34  ;;  %3109 = vlog2.f32 %v1413_v31 }
 0x5c5   : > { %v3100_v11 = vpop.eup %3099  ;;  %v1460_v20 = vadd.f32 %v1437_v6, %v3891_v25 }
 0x5c6   : > { %v3102_v14 = vpop.eup %3101  ;;  %v1469_v15 = vsub.f32 %v3817_v52, %v1453_v16  ;;  %v1439_v43 = vmul.f32 0.6931472, %v3100_v11  ;;  %v1415_v17 = vpop.xlane.xlu1 %1414 }
 0x5c7   : > { %v1417_v18 = vpop.xlane.xlu0 %1416  ;;  %v1476_v36 = vsub.f32 %v3807_v42, %v1460_v20  ;;  %v1433_v21 = vmul.f32 0.6931472, %v3102_v14  ;;  %3111 = vlog2.f32 %v1415_v17 }
 0x5c8   : > { %1486 = vst [vmem:[#allocation14 + $0x8] sm:$0xff] %v1469_v15  ;;  %v1461_v22 = vadd.f32 %v1439_v43, %v3897_v33  ;;  %3113 = vlog2.f32 %v1417_v18 }
 0x5c9   : > { %v3104_v23 = vpop.eup %3103  ;;  %1493 = vst [vmem:[#allocation14 + $0x40] sm:$0xff] %v1476_v36  ;;  %v1458_v34 = vadd.f32 %v1433_v21, %v3907_v45 }
 0x5ca   : > { %v3106_v28 = vpop.eup %3105  ;;  %v1477_v25 = vsub.f32 %v3819_v53, %v1461_v22  ;;  %v1435_v29 = vmul.f32 0.6931472, %v3104_v23  ;;  %v1419_v52 = vpop.xlane.xlu1 %1418 }
 0x5cb   : > { %v1474_v32 = vsub.f32 %v3827_v58, %v1458_v34  ;;  %v1429_v26 = vmul.f32 0.6931472, %v3106_v28  ;;  %3115 = vlog2.f32 %v1419_v52 }
 0x5cc   : > { %1494 = vst [vmem:[#allocation14 + $0x48] sm:$0xff] %v1477_v25  ;;  %v1459_v42 = vadd.f32 %v1435_v29, %v3905_v44 }
 0x5cd   : > { %v3108_v35 = vpop.eup %3107  ;;  %1491 = vst [vmem:[#allocation14 + $0x30] sm:$0xff] %v1474_v32  ;;  %v1456_v33 = vadd.f32 %v1429_v26, %v3917_v56 }
 0x5ce   : > { %v3110_v38 = vpop.eup %3109  ;;  %v1475_v39 = vsub.f32 %v3829_v59, %v1459_v42  ;;  %v1431_v45 = vmul.f32 0.6931472, %v3108_v35 }
 0x5cf   : > { %v1472_v40 = vsub.f32 %v3843_v0, %v1456_v33  ;;  %v1445_v53 = vmul.f32 0.6931472, %v3110_v38 }
 0x5d0   : > { %1492 = vst [vmem:[#allocation14 + $0x38] sm:$0xff] %v1475_v39  ;;  %v1457_v41 = vadd.f32 %v1431_v45, %v3915_v55 }
 0x5d1   : > { %v3112_v58 = vpop.eup %3111  ;;  %1489 = vst [vmem:[#allocation14 + $0x20] sm:$0xff] %v1472_v40  ;;  %v1464_v46 = vadd.f32 %v1445_v53, %v3929_v10 }
 0x5d2   : > { %v3114_v47 = vpop.eup %3113  ;;  %v1473_v44 = vsub.f32 %v3845_v1, %v1457_v41  ;;  %v1447_v48 = vmul.f32 0.6931472, %v3112_v58 }
 0x5d3   : > { %v1480_v56 = vsub.f32 %v3847_v2, %v1464_v46  ;;  %v1449_v49 = vmul.f32 0.6931472, %v3114_v47 }
 0x5d4   : > { %1490 = vst [vmem:[#allocation14 + $0x28] sm:$0xff] %v1473_v44  ;;  %v1465_v59 = vadd.f32 %v1447_v48, %v3927_v7 }
 0x5d5   : > { %v3116_v50 = vpop.eup %3115  ;;  %1497 = vst [vmem:[#allocation14 + $0x60] sm:$0xff] %v1480_v56  ;;  %v1466_v0 = vadd.f32 %v1449_v49, %v3941_v27 }
 0x5d6   : > { %v1481_v55 = vsub.f32 %v3849_v3, %v1465_v59  ;;  %v1451_v51 = vmul.f32 0.6931472, %v3116_v50 }
 0x5d7   : > { %v1482_v13 = vsub.f32 %v3863_v8, %v1466_v0 }
 0x5d8   : > { %1498 = vst [vmem:[#allocation14 + $0x68] sm:$0xff] %v1481_v55  ;;  %v1467_v10 = vadd.f32 %v1451_v51, %v3939_v24 }
 0x5d9   : > { %1499 = vst [vmem:[#allocation14 + $0x70] sm:$0xff] %v1482_v13 }
 0x5da   : > { %v1483_v1 = vsub.f32 %v3865_v9, %v1467_v10 }
 0x5dc   : > { %1500 = vst [vmem:[#allocation14 + $0x78] sm:$0xff] %v1483_v1 }
 0x5dd PF: > { %p1501_p3 = scmp.ne.s32.totalorder %s4325_s13, 1 }
 0x5df   : > { %p1502_p1 = pnand %p1501_p3, %p705_p2 }
 0x5e0   : > { %v1522_v2 = vld [vmem:[#allocation3] sm:$0xff] (!%p1502_p1)  ;;  %v1523_v3 = vld [vmem:[#allocation3 + $0x8] sm:$0xff] (!%p1502_p1)  ;;  %v1524_v7 = vld [vmem:[#allocation3 + $0x10] sm:$0xff] (!%p1502_p1)  ;;  %p2507_p4 = scmp.ne.s32.totalorder (!%p1502_p1), %s3431_s27, 2 }
 0x5e1   : > { %1505 = sbr.rel (%p1502_p1) target bundleno = 2558 (0x9fe), region = 84  ;;  %2762 = vmatprep.subr.bf16.mxu0 (!%p1502_p1), %v1522_v2  ;;  %v3117_v8 = vld [vmem:[#allocation5] sm:$0xff] (!%p1502_p1)   ;;  %v1525_v9 = vld [vmem:[#allocation3 + $0x18] sm:$0xff] (!%p1502_p1)  ;;  %v3126_v54 = vld [vmem:[%s3725_s16 + $0x8] sm:$0xff] (!%p1502_p1)  }
 0x5e2   : > { %2763 = vmatpush3.bf16.msra.mxu0 (!%p1502_p1), %v1522_v2  ;;  %2778 = vmatprep.mubr.bf16.mxu0 (!%p1502_p1), %v3117_v8  ;;  %v1526_v24 = vld [vmem:[#allocation3 + $0x20] sm:$0xff] (!%p1502_p1)  ;;  %v3127_v57 = vld [vmem:[%s3725_s16 + $0x10] sm:$0xff] (!%p1502_p1)   ;;  %v1527_v60 = vld [vmem:[#allocation3 + $0x28] sm:$0xff] (!%p1502_p1) }
 0x5e3   : > { %2764 = vmatprep.subr.bf16.mxu0 (!%p1502_p1), %v1523_v3  ;;  %v3125_v27 = vld [vmem:[%s3725_s16] sm:$0xff] (!%p1502_p1)   ;;  %v3128_v30 = vld [vmem:[%s3725_s16 + $0x18] sm:$0xff] (!%p1502_p1)   ;;  %v1528_v61 = vld [vmem:[#allocation3 + $0x30] sm:$0xff] (!%p1502_p1) }
 0x5e4   : > { %2794 = vmatprep.subr.bf16.mxu1 (!%p1502_p1), %v3125_v27  ;;  %v3129_v19 = vld [vmem:[%s3725_s16 + $0x20] sm:$0xff] (!%p1502_p1)   ;;  %v1529_v62 = vld [vmem:[#allocation3 + $0x38] sm:$0xff] (!%p1502_p1)  ;;  %v3130_v12 = vld [vmem:[%s3725_s16 + $0x28] sm:$0xff] (!%p1502_p1)  }
 0x5e5   : > { %2795 = vmatpush3.bf16.msra.mxu1 (!%p1502_p1), %v3125_v27  ;;  %v3118_v63 = vld [vmem:[#allocation5 + $0x8] sm:$0xff] (!%p1502_p1)   ;;  %v3119_v37 = vld [vmem:[#allocation5 + $0x10] sm:$0xff] (!%p1502_p1)   ;;  %v3120_v4 = vld [vmem:[#allocation5 + $0x18] sm:$0xff] (!%p1502_p1)  }
 0x5e6   : > { %2765 = vmatpush3.bf16.msra.mxu0 (!%p1502_p1), %v1523_v3  ;;  %2796 = vmatprep.subr.bf16.mxu1 (!%p1502_p1), %v3126_v54  ;;  %v3121_v5 = vld [vmem:[#allocation5 + $0x20] sm:$0xff] (!%p1502_p1)   ;;  %v3122_v31 = vld [vmem:[#allocation5 + $0x28] sm:$0xff] (!%p1502_p1)   ;;  %v3123_v6 = vld [vmem:[#allocation5 + $0x30] sm:$0xff] (!%p1502_p1)  }
 0x5e7   : > { %2766 = vmatprep.subr.bf16.mxu0 (!%p1502_p1), %v1524_v7  ;;  %v3124_v16 = vld [vmem:[#allocation5 + $0x38] sm:$0xff] (!%p1502_p1)   ;;  %v3131_v11 = vld [vmem:[%s3725_s16 + $0x30] sm:$0xff] (!%p1502_p1)   ;;  %v1531_v18 = vld [vmem:[#allocation4] sm:$0xff] (!%p1502_p1) }
 0x5e8   : > { %v3132_v20 = vld [vmem:[%s3725_s16 + $0x38] sm:$0xff]   ;;  %v1533_v14 = vld [vmem:[#allocation4 + $0x10] sm:$0xff]  ;;  %v1532_v36 = vld [vmem:[#allocation4 + $0x8] sm:$0xff] }
 0x5e9   : > { %2797 = vmatpush3.bf16.msra.mxu1 %v3126_v54  ;;  %v1534_v43 = vld [vmem:[#allocation4 + $0x18] sm:$0xff]  ;;  %v1537_v32 = vld [vmem:[#allocation4 + $0x30] sm:$0xff]  ;;  %v1535_v33 = vld [vmem:[#allocation4 + $0x20] sm:$0xff] }
 0x5ea   : > { %2767 = vmatpush3.bf16.msra.mxu0 %v1524_v7  ;;  %2798 = vmatprep.subr.bf16.mxu1 %v3127_v57  ;;  %v1538_v42 = vld [vmem:[#allocation4 + $0x38] sm:$0xff]  ;;  %v1536_v38 = vld [vmem:[#allocation4 + $0x28] sm:$0xff]  ;;  %v1541_v44 = vld [vmem:[#allocation4 + $0x50] sm:$0xff] }
 0x5eb   : > { %2768 = vmatprep.subr.bf16.mxu0 %v1525_v9  ;;  %v1542_v56 = vld [vmem:[#allocation4 + $0x58] sm:$0xff]  ;;  %v1539_v59 = vld [vmem:[#allocation4 + $0x40] sm:$0xff]  ;;  %v1540_v50 = vld [vmem:[#allocation4 + $0x48] sm:$0xff] }
 0x5ec   : > { %v1545_v8 = vld [vmem:[#allocation4 + $0x70] sm:$0xff]  ;;  %v1543_v27 = vld [vmem:[#allocation4 + $0x60] sm:$0xff]  ;;  %v1544_v54 = vld [vmem:[#allocation4 + $0x68] sm:$0xff] }
 0x5ed   : > { %2799 = vmatpush3.bf16.msra.mxu1 %v3127_v57 }
 0x5ee   : > { %2769 = vmatpush3.bf16.msra.mxu0 %v1525_v9  ;;  %2800 = vmatprep.subr.bf16.mxu1 %v3128_v30  ;;  %v1546_v9 = vld [vmem:[#allocation4 + $0x78] sm:$0xff] }
 0x5ef   : > { %2770 = vmatprep.subr.bf16.mxu0 %v1526_v24 }
 0x5f1   : > { %2801 = vmatpush3.bf16.msra.mxu1 %v3128_v30 }
 0x5f2   : > { %2771 = vmatpush3.bf16.msra.mxu0 %v1526_v24  ;;  %2802 = vmatprep.subr.bf16.mxu1 %v3129_v19 }
 0x5f3   : > { %2772 = vmatprep.subr.bf16.mxu0 %v1527_v60 }
 0x5f5   : > { %2803 = vmatpush3.bf16.msra.mxu1 %v3129_v19 }
 0x5f6   : > { %2773 = vmatpush3.bf16.msra.mxu0 %v1527_v60  ;;  %2804 = vmatprep.subr.bf16.mxu1 %v3130_v12 }
 0x5f7   : > { %2774 = vmatprep.subr.bf16.mxu0 %v1528_v61 }
 0x5f9   : > { %2805 = vmatpush3.bf16.msra.mxu1 %v3130_v12 }
 0x5fa   : > { %2775 = vmatpush3.bf16.msra.mxu0 %v1528_v61  ;;  %2806 = vmatprep.subr.bf16.mxu1 %v3131_v11 }
 0x5fb   : > { %2776 = vmatprep.subr.bf16.mxu0 %v1529_v62 }
 0x5fd   : > { %2807 = vmatpush3.bf16.msra.mxu1 %v3131_v11 }
 0x5fe   : > { %2777 = vmatpush3.bf16.msra.mxu0 %v1529_v62  ;;  %2808 = vmatprep.subr.bf16.mxu1 %v3132_v20 }
 0x601   : > { %2779 = vmatmul.mubr.bf16.vlgmr.msra.gmra.mrb[0].mxu0 %v3118_v63  ;;  %2809 = vmatpush3.bf16.msra.mxu1 %v3132_v20 }
 0x602   : > { %2782 = vmatprep.mubr.bf16.mxu0 %v3119_v37 }
 0x609   : > { %2783 = vmatmul.mubr.bf16.gmra.mrb[4].mxu0 %v3120_v4 }
 0x60a   : > { %2786 = vmatprep.mubr.bf16.mxu0 %v3121_v5 }
 0x611   : > { %2787 = vmatmul.mubr.bf16.gmra.mrb[8].mxu0 %v3122_v31 }
 0x612   : > { %2790 = vmatprep.mubr.bf16.mxu0 %v3123_v6 }
 0x619   : > { %2791 = vmatmul.mubr.bf16.gmra.mrb[12].mxu0 %v3124_v16 }
 0x6d4   : > { %v2780_v15 = vpop.f32.mrb[0].mxu0 }
 0x6d5   : > { %v1629_v17 = vpop.f32.mrb[1].mxu0  ;;  %v1638_v22 = vadd.f32 %v2780_v15, %v1533_v14 }
 0x6d6   : > { %v2781_v21 = vpop.f32.mrb[2].mxu0  ;;  %v1630_v28 = vadd.f32 %v1629_v17, %v1531_v18 }
 0x6d7   : > { %v1641_v23 = vadd.f32 %v2781_v21, %v1534_v43  ;;  %v1632_v34 = vpop.f32.mrb[3].mxu0 }
 0x6d8   : > { %v1633_v25 = vadd.f32 %v1632_v34, %v1532_v36 }
 0x6d9   : > { %v1693_v29 = vpack.c.bf16 %v1641_v23, %v1638_v22 }
 0x6da   : > { %v1692_v52 = vpack.c.bf16 %v1633_v25, %v1630_v28 }
 0x6dc   : > { %v2784_v26 = vpop.f32.mrb[4].mxu0  ;;  %2810 = vmatprep.mubr.bf16.mxu1 %v1692_v52 }
 0x6dd   : > { %v1645_v35 = vpop.f32.mrb[5].mxu0  ;;  %2811 = vmatmul.mubr.bf16.vlgmr.msra.gmra.mrb[0].mxu1 %v1693_v29  ;;  %v1654_v45 = vadd.f32 %v2784_v26, %v1537_v32 }
 0x6de   : > { %v2785_v39 = vpop.f32.mrb[6].mxu0  ;;  %v1646_v41 = vadd.f32 %v1645_v35, %v1535_v33 }
 0x6df   : > { %v1657_v40 = vadd.f32 %v2785_v39, %v1538_v42  ;;  %v1648_v53 = vpop.f32.mrb[7].mxu0 }
 0x6e0   : > { %v1649_v58 = vadd.f32 %v1648_v53, %v1536_v38 }
 0x6e1   : > { %v1695_v46 = vpack.c.bf16 %v1657_v40, %v1654_v45 }
 0x6e2   : > { %v1694_v47 = vpack.c.bf16 %v1649_v58, %v1646_v41 }
 0x6e4   : > { %v2788_v48 = vpop.f32.mrb[8].mxu0  ;;  %2814 = vmatprep.mubr.bf16.mxu1 %v1694_v47 }
 0x6e5   : > { %v1661_v49 = vpop.f32.mrb[9].mxu0  ;;  %2815 = vmatmul.mubr.bf16.gmra.mrb[4].mxu1 %v1695_v46  ;;  %v1670_v55 = vadd.f32 %v2788_v48, %v1541_v44 }
 0x6e6   : > { %v2789_v0 = vpop.f32.mrb[10].mxu0  ;;  %v1662_v10 = vadd.f32 %v1661_v49, %v1539_v59  ;;  %v3133_v59 = vld [vmem:[#allocation13] sm:$0xff] (!%p2507_p4)  }
 0x6e7   : > { %v1673_v51 = vadd.f32 %v2789_v0, %v1542_v56  ;;  %v1664_v13 = vpop.f32.mrb[11].mxu0  ;;  %2826 = vmatprep.subr.bf16.mxu0 (!%p2507_p4), %v3133_v59  ;;  %2890 = vmatprep.subr.bf16.mxu1 (!%p2507_p4), %v3133_v59  ;;  %v3135_v0 = vld [vmem:[#allocation13 + $0x10] sm:$0xff] (!%p2507_p4)  }
 0x6e8   : > { %v1665_v1 = vadd.f32 %v1664_v13, %v1540_v50  ;;  %v3134_v50 = vld [vmem:[#allocation13 + $0x8] sm:$0xff] (!%p2507_p4)   ;;  %2827 = vmatpush3.bf16.msra.mxu0 (!%p2507_p4), %v3133_v59  ;;  %2898 = vmatpush3.bf16.msra.mxu1 (!%p2507_p4), %v3133_v59 }
 0x6e9   : > { %v1697_v2 = vpack.c.bf16 %v1673_v51, %v1670_v55  ;;  %2828 = vmatprep.subr.bf16.mxu0 (!%p2507_p4), %v3134_v50  ;;  %2891 = vmatprep.subr.bf16.mxu1 (!%p2507_p4), %v3134_v50  ;;  %v3136_v55 = vld [vmem:[#allocation13 + $0x18] sm:$0xff] (!%p2507_p4)   ;;  %v3137_v51 = vld [vmem:[#allocation13 + $0x20] sm:$0xff] (!%p2507_p4)   ;;  %v3138_v13 = vld [vmem:[#allocation13 + $0x28] sm:$0xff] (!%p2507_p4)  }
 0x6ea   : > { %v1696_v3 = vpack.c.bf16 %v1665_v1, %v1662_v10  ;;  %v3139_v10 = vld [vmem:[#allocation13 + $0x30] sm:$0xff] (!%p2507_p4)   ;;  %v3140_v1 = vld [vmem:[#allocation13 + $0x38] sm:$0xff] (!%p2507_p4)  }
 0x6ec   : > { %v2792_v7 = vpop.f32.mrb[12].mxu0  ;;  %2818 = vmatprep.mubr.bf16.mxu1 %v1696_v3  ;;  %2829 = vmatpush3.bf16.msra.mxu0 (!%p2507_p4), %v3134_v50 }
 0x6ed   : > { %v1677_v24 = vpop.f32.mrb[13].mxu0  ;;  %2819 = vmatmul.mubr.bf16.gmra.mrb[8].mxu1 %v1697_v2  ;;  %v1686_v60 = vadd.f32 %v2792_v7, %v1545_v8  ;;  %2830 = vmatprep.subr.bf16.mxu0 (!%p2507_p4), %v3135_v0  ;;  %v2069_v2 = vlaneseq (!%p2507_p4)  ;;  %v2508_v8 = vld [vmem:[%s4286_s6] ss:$0 sm:$0xff] (!%p2507_p4) }
 0x6ee   : > { %v2793_v57 = vpop.f32.mrb[14].mxu0  ;;  %v1678_v19 = vadd.f32 %v1677_v24, %v1543_v27  ;;  %2899 = vmatpush3.bf16.msra.mxu1 (!%p2507_p4), %v3134_v50 }
 0x6ef   : > { %v1689_v30 = vadd.f32 %v2793_v57, %v1546_v9  ;;  %v1680_v61 = vpop.f32.mrb[15].mxu0  ;;  %2892 = vmatprep.subr.bf16.mxu1 (!%p2507_p4), %v3135_v0  ;;  %v4025_v3 = vand.u32 (!%p2507_p4), 127, %v2069_v2 }
 0x6f0   : > { %v1681_v62 = vadd.f32 %v1680_v61, %v1544_v54  ;;  %2831 = vmatpush3.bf16.msra.mxu0 (!%p2507_p4), %v3135_v0 }
 0x6f1   : > { %v1699_v12 = vpack.c.bf16 %v1689_v30, %v1686_v60  ;;  %2832 = vmatprep.subr.bf16.mxu0 (!%p2507_p4), %v3136_v55  ;;  %vm2071_vm1 = vcmp.lt.s32.totalorder (!%p2507_p4), %v4025_v3, 8 }
 0x6f2   : > { %v1698_v63 = vpack.c.bf16 %v1681_v62, %v1678_v19  ;;  %2900 = vmatpush3.bf16.msra.mxu1 (!%p2507_p4), %v3135_v0 }
 0x6f3   : > { %2893 = vmatprep.subr.bf16.mxu1 (!%p2507_p4), %v3136_v55 }
 0x6f4   : > { %2822 = vmatprep.mubr.bf16.mxu1 %v1698_v63  ;;  %2833 = vmatpush3.bf16.msra.mxu0 (!%p2507_p4), %v3136_v55 }
 0x6f5   : > { %2823 = vmatmul.mubr.bf16.gmra.mrb[12].mxu1 %v1699_v12  ;;  %2834 = vmatprep.subr.bf16.mxu0 (!%p2507_p4), %v3137_v51 }
 0x6f6   : > { %2901 = vmatpush3.bf16.msra.mxu1 (!%p2507_p4), %v3136_v55 }
 0x6f7   : > { %2894 = vmatprep.subr.bf16.mxu1 (!%p2507_p4), %v3137_v51 }
 0x6f8   : > { %2835 = vmatpush3.bf16.msra.mxu0 (!%p2507_p4), %v3137_v51 }
 0x6f9   : > { %2836 = vmatprep.subr.bf16.mxu0 (!%p2507_p4), %v3138_v13 }
 0x6fa   : > { %2902 = vmatpush3.bf16.msra.mxu1 (!%p2507_p4), %v3137_v51 }
 0x6fb   : > { %2895 = vmatprep.subr.bf16.mxu1 (!%p2507_p4), %v3138_v13 }
 0x6fc   : > { %2837 = vmatpush3.bf16.msra.mxu0 (!%p2507_p4), %v3138_v13 }
 0x6fd   : > { %2838 = vmatprep.subr.bf16.mxu0 (!%p2507_p4), %v3139_v10 }
 0x6fe   : > { %2903 = vmatpush3.bf16.msra.mxu1 (!%p2507_p4), %v3138_v13 }
 0x6ff   : > { %2896 = vmatprep.subr.bf16.mxu1 (!%p2507_p4), %v3139_v10 }
 0x700   : > { %2839 = vmatpush3.bf16.msra.mxu0 (!%p2507_p4), %v3139_v10 }
 0x701   : > { %2840 = vmatprep.subr.bf16.mxu0 (!%p2507_p4), %v3140_v1 }
 0x702   : > { %2904 = vmatpush3.bf16.msra.mxu1 (!%p2507_p4), %v3139_v10 }
 0x703   : > { %2897 = vmatprep.subr.bf16.mxu1 (!%p2507_p4), %v3140_v1 }
 0x704   : > { %2841 = vmatpush3.bf16.msra.mxu0 (!%p2507_p4), %v3140_v1 }
 0x706   : > { %2905 = vmatpush3.bf16.msra.mxu1 (!%p2507_p4), %v3140_v1 }
 0x7b0   : > { %v2812_v37 = vpop.f32.mrb[0].mxu1 }
 0x7b1   : > { %v1798_v4 = vpop.f32.mrb[1].mxu1  ;;  %v1863_v31 = vmax.f32 %v2812_v37, 0.0 }
 0x7b2   : > { %v2813_v5 = vpop.f32.mrb[2].mxu1  ;;  %v1861_v11 = vmax.f32 %v1798_v4, 0.0 }
 0x7b3   : > { %v1864_v6 = vmax.f32 %v2813_v5, 0.0  ;;  %v1801_v16 = vpop.f32.mrb[3].mxu1 }
 0x7b4   : > { %v1862_v20 = vmax.f32 %v1801_v16, 0.0 }
 0x7b5   : > { %v4012_v14 = vpack.c.bf16 %v1864_v6, %v1863_v31 }
 0x7b6   : > { %v1877_v15 = vpack.c.bf16 %v1862_v20, %v1861_v11 }
 0x7b7   : > { %1890 = vst [vmem:[#allocation2 + $0x8] sm:$0xff] %v4012_v14 }
 0x7b8   : > { %1889 = vst [vmem:[#allocation2] sm:$0xff] %v1877_v15  ;;  %v2816_v43 = vpop.f32.mrb[4].mxu1  ;;  %2842 = vmatprep.mubr.bf16.mxu0 (!%p2507_p4), %v1877_v15 }
 0x7b9   : > { %v1814_v17 = vpop.f32.mrb[5].mxu1  ;;  %v1867_v36 = vmax.f32 %v2816_v43, 0.0  ;;  %2843 = vmatmul.mubr.bf16.vlgmr.msra.gmra.mrb[0].mxu0 (!%p2507_p4), %v4012_v14 }
 0x7ba   : > { %v2817_v18 = vpop.f32.mrb[6].mxu1  ;;  %v1865_v23 = vmax.f32 %v1814_v17, 0.0 }
 0x7bb   : > { %v1868_v21 = vmax.f32 %v2817_v18, 0.0  ;;  %v1817_v22 = vpop.f32.mrb[7].mxu1 }
 0x7bc   : > { %v1866_v34 = vmax.f32 %v1817_v22, 0.0 }
 0x7bd   : > { %v4015_v28 = vpack.c.bf16 %v1868_v21, %v1867_v36 }
 0x7be   : > { %v4017_v25 = vpack.c.bf16 %v1866_v34, %v1865_v23 }
 0x7bf   : > { %1892 = vst [vmem:[#allocation2 + $0x18] sm:$0xff] %v4015_v28 }
 0x7c0   : > { %1891 = vst [vmem:[#allocation2 + $0x10] sm:$0xff] %v4017_v25  ;;  %v2820_v29 = vpop.f32.mrb[8].mxu1  ;;  %2846 = vmatprep.mubr.bf16.mxu0 (!%p2507_p4), %v4017_v25 }
 0x7c1   : > { %v1830_v52 = vpop.f32.mrb[9].mxu1  ;;  %v1871_v26 = vmax.f32 %v2820_v29, 0.0  ;;  %2847 = vmatmul.mubr.bf16.gmra.mrb[4].mxu0 (!%p2507_p4), %v4015_v28 }
 0x7c2   : > { %v2821_v32 = vpop.f32.mrb[10].mxu1  ;;  %v1869_v33 = vmax.f32 %v1830_v52, 0.0 }
 0x7c3   : > { %v1872_v42 = vmax.f32 %v2821_v32, 0.0  ;;  %v1833_v35 = vpop.f32.mrb[11].mxu1 }
 0x7c4   : > { %v1870_v38 = vmax.f32 %v1833_v35, 0.0 }
 0x7c5   : > { %v1882_v39 = vpack.c.bf16 %v1872_v42, %v1871_v26 }
 0x7c6   : > { %v1881_v45 = vpack.c.bf16 %v1870_v38, %v1869_v33 }
 0x7c7   : > { %1894 = vst [vmem:[#allocation2 + $0x28] sm:$0xff] %v1882_v39 }
 0x7c8   : > { %1893 = vst [vmem:[#allocation2 + $0x20] sm:$0xff] %v1881_v45  ;;  %v2824_v40 = vpop.f32.mrb[12].mxu1  ;;  %2850 = vmatprep.mubr.bf16.mxu1 (!%p2507_p4), %v1881_v45 }
 0x7c9   : > { %v1846_v53 = vpop.f32.mrb[13].mxu1  ;;  %v1875_v58 = vmax.f32 %v2824_v40, 0.0  ;;  %2851 = vmatmul.mubr.bf16.vlgmr.msra.gmra.mrb[0].mxu1 (!%p2507_p4), %v1882_v39 }
 0x7ca   : > { %v2825_v41 = vpop.f32.mrb[14].mxu1  ;;  %v1873_v44 = vmax.f32 %v1846_v53, 0.0  ;;  %1900 = sbr.rel (%p2507_p4) target bundleno = 2558 (0x9fe), region = 88 }
 0x7cb   : > { %v1876_v46 = vmax.f32 %v2825_v41, 0.0  ;;  %v1849_v47 = vpop.f32.mrb[15].mxu1 }
 0x7cc   : > { %v1874_v48 = vmax.f32 %v1849_v47, 0.0 }
 0x7cd   : > { %v1884_v56 = vpack.c.bf16 %v1876_v46, %v1875_v58 }
 0x7ce   : > { %v1883_v49 = vpack.c.bf16 %v1874_v48, %v1873_v44 }
 0x7cf   : > { %1896 = vst [vmem:[#allocation2 + $0x38] sm:$0xff] %v1884_v56 }
 0x7d0   : > { %1895 = vst [vmem:[#allocation2 + $0x30] sm:$0xff] %v1883_v49  ;;  %2854 = vmatprep.mubr.bf16.mxu1 (!%p2507_p4), %v1883_v49 }
 0x7d1   : > { %2855 = vmatmul.mubr.bf16.gmra.mrb[4].mxu1 %v1884_v56 }
 0x88c   : > { %v2844_v7 = vpop.f32.mrb[0].mxu0 }
 0x88d   : > { %v4031_v24 = vadd.f32 %v2844_v7, %v2508_v8  ;;  %v2006_v54 = vpop.f32.mrb[1].mxu0 }
 0x88e   : > { %v2845_v60 = vpop.f32.mrb[2].mxu0  ;;  %v4035_v61 = vadd.f32 %v2508_v8, %v2006_v54 }
 0x88f   : > { %v4037_v19 = vadd.f32 %v2845_v60, %v2508_v8  ;;  %v2009_v62 = vpop.f32.mrb[3].mxu0  ;;  %v2074_v37 = vsel %vm2071_vm1, %v4031_v24, -1e+30 }
 0x890   : > { %2092 = vmax.xlane.f32.xlu1 %v2074_v37  ;;  %v2072_v6 = vsel %vm2071_vm1, %v4035_v61, -1e+30  ;;  %v4055_v17 = vadd.f32 %v2508_v8, %v2009_v62 }
 0x891   : > { %v2075_v31 = vsel %vm2071_vm1, %v4037_v19, -1e+30 }
 0x892   : > { %v2073_v29 = vsel %vm2071_vm1, %v4055_v17, -1e+30 }
 0x894   : > { %2094 = vmax.xlane.f32.xlu1 %v2075_v31  ;;  %v2848_v16 = vpop.f32.mrb[4].mxu0 }
 0x895   : > { %v2022_v20 = vpop.f32.mrb[5].mxu0  ;;  %v4065_v34 = vadd.f32 %v2848_v16, %v2508_v8 }
 0x896   : > { %v2849_v15 = vpop.f32.mrb[6].mxu0  ;;  %v4081_v26 = vadd.f32 %v2508_v8, %v2022_v20 }
 0x897   : > { %v2025_v22 = vpop.f32.mrb[7].mxu0  ;;  %v4067_v28 = vadd.f32 %v2849_v15, %v2508_v8  ;;  %v2078_v32 = vsel %vm2071_vm1, %v4065_v34, -1e+30 }
 0x898   : > { %v4083_v42 = vadd.f32 %v2508_v8, %v2025_v22  ;;  %v2076_v39 = vsel %vm2071_vm1, %v4081_v26, -1e+30 }
 0x899   : > { %v2079_v52 = vsel %vm2071_vm1, %v4067_v28, -1e+30 }
 0x89a   : > { %v2077_v38 = vsel %vm2071_vm1, %v4083_v42, -1e+30 }
 0x89c   : > { %v2852_v9 = vpop.f32.mrb[0].mxu1 }
 0x89d   : > { %v4033_v27 = vadd.f32 %v2852_v9, %v2508_v8  ;;  %v2038_v57 = vpop.f32.mrb[1].mxu1 }
 0x89e   : > { %v2853_v30 = vpop.f32.mrb[2].mxu1  ;;  %v4045_v4 = vadd.f32 %v2508_v8, %v2038_v57 }
 0x89f   : > { %v2041_v12 = vpop.f32.mrb[3].mxu1  ;;  %v2082_v63 = vsel %vm2071_vm1, %v4033_v27, -1e+30  ;;  %v4047_v5 = vadd.f32 %v2853_v30, %v2508_v8 }
 0x8a0   : > { %2108 = vmax.xlane.f32.xlu0 %v2082_v63  ;;  %v4057_v18 = vadd.f32 %v2508_v8, %v2041_v12  ;;  %v2080_v21 = vsel %vm2071_vm1, %v4045_v4, -1e+30 }
 0x8a1   : > { %v2083_v36 = vsel %vm2071_vm1, %v4047_v5, -1e+30 }
 0x8a2   : > { %2110 = vmax.xlane.f32.xlu1 %v2083_v36  ;;  %v2081_v25 = vsel %vm2071_vm1, %v4057_v18, -1e+30 }
 0x8a4   : > { %2088 = vmax.xlane.f32.xlu0 %v2072_v6  ;;  %v2856_v11 = vpop.f32.mrb[4].mxu1 }
 0x8a5   : > { %v2054_v14 = vpop.f32.mrb[5].mxu1  ;;  %v4101_v53 = vadd.f32 %v2856_v11, %v2508_v8 }
 0x8a6   : > { %v2857_v43 = vpop.f32.mrb[6].mxu1  ;;  %2106 = vmax.xlane.f32.xlu1 %v2081_v25  ;;  %v4085_v35 = vadd.f32 %v2508_v8, %v2054_v14 }
 0x8a7   : > { %v2057_v23 = vpop.f32.mrb[7].mxu1  ;;  %v4103_v41 = vadd.f32 %v2857_v43, %v2508_v8  ;;  %v2086_v46 = vsel %vm2071_vm1, %v4101_v53, -1e+30 }
 0x8a8   : > { %2104 = vmax.xlane.f32.xlu0 %v2080_v21  ;;  %v4087_v33 = vadd.f32 %v2508_v8, %v2057_v23  ;;  %v2084_v40 = vsel %vm2071_vm1, %v4085_v35, -1e+30 }
 0x8a9   : > { %v2087_v58 = vsel %vm2071_vm1, %v4103_v41, -1e+30 }
 0x8aa   : > { %2102 = vmax.xlane.f32.xlu1 %v2079_v52  ;;  %v2085_v45 = vsel %vm2071_vm1, %v4087_v33, -1e+30 }
 0x8ac   : > { %2090 = vmax.xlane.f32.xlu0 %v2073_v29 }
 0x8ae   : > { %2098 = vmax.xlane.f32.xlu1 %v2077_v38 }
 0x8b0   : > { %2100 = vmax.xlane.f32.xlu0 %v2078_v32 }
 0x8b2   : > { %2114 = vmax.xlane.f32.xlu1 %v2085_v45 }
 0x8b4   : > { %2096 = vmax.xlane.f32.xlu0 %v2076_v39 }
 0x8b6   : > { %2118 = vmax.xlane.f32.xlu1 %v2087_v58 }
 0x8b8   : > { %2112 = vmax.xlane.f32.xlu0 %v2084_v40 }
 0x8bc   : > { %2116 = vmax.xlane.f32.xlu0 %v2086_v46 }
 0x91d   : > { %v4113_v44 = vpop.xlane.xlu1 %2092 }
 0x91e   : > { %v2122_v56 = vsub.f32 %v4031_v24, %v4113_v44 }
 0x920   : > { %v2140_v49 = vmul.f32 1.442695, %v2122_v56 }
 0x921   : > { %v4119_v50 = vpop.xlane.xlu1 %2094 }
 0x922   : > { %v2123_v55 = vsub.f32 %v4037_v19, %v4119_v50  ;;  %3141 = vpow2.f32 %v2140_v49 }
 0x924   : > { %v2142_v13 = vmul.f32 1.442695, %v2123_v55 }
 0x92c   : > { %v3142_v63 = vpop.eup %3141 }
 0x92d   : > { %v4111_v47 = vpop.xlane.xlu0 %2108  ;;  %v2170_v20 = vsel %vm2071_vm1, %v3142_v63, 0.0 }
 0x92e   : > { %v2130_v48 = vsub.f32 %v4033_v27, %v4111_v47  ;;  %2188 = vadd.xlane.f32.xlu0 %v2170_v20 }
 0x92f   : > { %v4127_v1 = vpop.xlane.xlu1 %2110 }
 0x930   : > { %v2156_v59 = vmul.f32 1.442695, %v2130_v48  ;;  %v2131_v8 = vsub.f32 %v4047_v5, %v4127_v1 }
 0x931   : > { %v4121_v0 = vpop.xlane.xlu0 %2088 }
 0x932   : > { %v2120_v51 = vsub.f32 %v4035_v61, %v4121_v0  ;;  %3143 = vpow2.f32 %v2156_v59  ;;  %v2158_v9 = vmul.f32 1.442695, %v2131_v8 }
 0x933   : > { %3145 = vpow2.f32 %v2142_v13  ;;  %v4135_v57 = vpop.xlane.xlu1 %2106 }
 0x934   : > { %v2136_v10 = vmul.f32 1.442695, %v2120_v51  ;;  %v2129_v30 = vsub.f32 %v4057_v18, %v4135_v57 }
 0x935   : > { %v4129_v2 = vpop.xlane.xlu0 %2104 }
 0x936   : > { %v2128_v7 = vsub.f32 %v4045_v4, %v4129_v2  ;;  %3147 = vpow2.f32 %v2136_v10  ;;  %v2154_v37 = vmul.f32 1.442695, %v2129_v30 }
 0x937   : > { %3149 = vpow2.f32 %v2158_v9  ;;  %v4143_v31 = vpop.xlane.xlu1 %2102 }
 0x938   : > { %v2152_v54 = vmul.f32 1.442695, %v2128_v7  ;;  %v2127_v16 = vsub.f32 %v4067_v28, %v4143_v31 }
 0x939   : > { %v4137_v60 = vpop.xlane.xlu0 %2090 }
 0x93a   : > { %v2121_v62 = vsub.f32 %v4055_v17, %v4137_v60  ;;  %3151 = vpow2.f32 %v2152_v54  ;;  %v2150_v36 = vmul.f32 1.442695, %v2127_v16 }
 0x93b   : > { %v4153_v21 = vpop.xlane.xlu1 %2098 }
 0x93c   : > { %v2138_v12 = vmul.f32 1.442695, %v2121_v62  ;;  %v3144_v14 = vpop.eup %3143  ;;  %v2125_v25 = vsub.f32 %v4083_v42, %v4153_v21 }
 0x93d   : > { %v4145_v6 = vpop.xlane.xlu0 %2100  ;;  %v3146_v15 = vpop.eup %3145  ;;  %v2178_v52 = vsel %vm2071_vm1, %v3144_v14, 0.0 }
 0x93e   : > { %v2126_v11 = vsub.f32 %v4065_v34, %v4145_v6  ;;  %3153 = vpow2.f32 %v2138_v12  ;;  %v2171_v23 = vsel %vm2071_vm1, %v3146_v15, 0.0  ;;  %2204 = vadd.xlane.f32.xlu0 %v2178_v52  ;;  %v2146_v45 = vmul.f32 1.442695, %v2125_v25 }
 0x93f   : > { %3155 = vpow2.f32 %v2154_v37  ;;  %2190 = vadd.xlane.f32.xlu1 %v2171_v23  ;;  %v4165_v40 = vpop.xlane.xlu1 %2114 }
 0x940   : > { %v2148_v43 = vmul.f32 1.442695, %v2126_v11  ;;  %v3148_v32 = vpop.eup %3147  ;;  %v2133_v48 = vsub.f32 %v4087_v33, %v4165_v40 }
 0x941   : > { %v4155_v22 = vpop.xlane.xlu0 %2096  ;;  %v3150_v38 = vpop.eup %3149  ;;  %v2168_v49 = vsel %vm2071_vm1, %v3148_v32, 0.0 }
 0x942   : > { %v2124_v29 = vsub.f32 %v4081_v26, %v4155_v22  ;;  %3157 = vpow2.f32 %v2148_v43  ;;  %v2179_v46 = vsel %vm2071_vm1, %v3150_v38, 0.0  ;;  %2184 = vadd.xlane.f32.xlu0 %v2168_v49  ;;  %v2162_v13 = vmul.f32 1.442695, %v2133_v48 }
 0x943   : > { %3159 = vpow2.f32 %v2150_v36  ;;  %2206 = vadd.xlane.f32.xlu1 %v2179_v46  ;;  %v4177_v10 = vpop.xlane.xlu1 %2118 }
 0x944   : > { %v2144_v39 = vmul.f32 1.442695, %v2124_v29  ;;  %v3152_v59 = vpop.eup %3151  ;;  %v2135_v7 = vsub.f32 %v4103_v41, %v4177_v10 }
 0x945   : > { %v4167_v58 = vpop.xlane.xlu0 %2112  ;;  %v2176_v54 = vsel %vm2071_vm1, %v3152_v59, 0.0 }
 0x946   : > { %v2132_v56 = vsub.f32 %v4085_v35, %v4167_v58  ;;  %3161 = vpow2.f32 %v2144_v39  ;;  %2200 = vadd.xlane.f32.xlu0 %v2176_v54  ;;  %v2166_v37 = vmul.f32 1.442695, %v2135_v7 }
 0x947   : > { %3163 = vpow2.f32 %v2146_v45 }
 0x948   : > { %v2160_v55 = vmul.f32 1.442695, %v2132_v56  ;;  %v3154_v51 = vpop.eup %3153 }
 0x949   : > { %v4179_v8 = vpop.xlane.xlu0 %2116  ;;  %v2169_v30 = vsel %vm2071_vm1, %v3154_v51, 0.0  ;;  %v3156_v62 = vpop.eup %3155 }
 0x94a   : > { %v2134_v9 = vsub.f32 %v4101_v53, %v4179_v8  ;;  %3165 = vpow2.f32 %v2160_v55  ;;  %2186 = vadd.xlane.f32.xlu1 %v2169_v30  ;;  %v2177_v16 = vsel %vm2071_vm1, %v3156_v62, 0.0 }
 0x94b   : > { %3167 = vpow2.f32 %v2162_v13 }
 0x94c   : > { %v2164_v12 = vmul.f32 1.442695, %v2134_v9  ;;  %v3158_v63 = vpop.eup %3157 }
 0x94d   : > { %v2174_v11 = vsel %vm2071_vm1, %v3158_v63, 0.0  ;;  %v3160_v20 = vpop.eup %3159 }
 0x94e   : > { %3169 = vpow2.f32 %v2164_v12  ;;  %2202 = vadd.xlane.f32.xlu1 %v2177_v16  ;;  %2196 = vadd.xlane.f32.xlu0 %v2174_v11  ;;  %v2175_v15 = vsel %vm2071_vm1, %v3160_v20, 0.0 }
 0x94f   : > { %3171 = vpow2.f32 %v2166_v37 }
 0x950   : > { %v3162_v14 = vpop.eup %3161 }
 0x951   : > { %v2172_v43 = vsel %vm2071_vm1, %v3162_v14, 0.0  ;;  %v3164_v36 = vpop.eup %3163 }
 0x952   : > { %2198 = vadd.xlane.f32.xlu1 %v2175_v15  ;;  %2192 = vadd.xlane.f32.xlu0 %v2172_v43  ;;  %v2173_v25 = vsel %vm2071_vm1, %v3164_v36, 0.0 }
 0x954   : > { %v3166_v23 = vpop.eup %3165 }
 0x955   : > { %v2180_v29 = vsel %vm2071_vm1, %v3166_v23, 0.0  ;;  %v3168_v52 = vpop.eup %3167 }
 0x956   : > { %2194 = vadd.xlane.f32.xlu1 %v2173_v25  ;;  %2208 = vadd.xlane.f32.xlu0 %v2180_v29  ;;  %v2181_v38 = vsel %vm2071_vm1, %v3168_v52, 0.0 }
 0x958   : > { %v3170_v32 = vpop.eup %3169 }
 0x959   : > { %v2182_v39 = vsel %vm2071_vm1, %v3170_v32, 0.0  ;;  %v3172_v45 = vpop.eup %3171 }
 0x95a   : > { %2210 = vadd.xlane.f32.xlu1 %v2181_v38  ;;  %2212 = vadd.xlane.f32.xlu0 %v2182_v39  ;;  %v2183_v46 = vsel %vm2071_vm1, %v3172_v45, 0.0 }
 0x95e   : > { %2214 = vadd.xlane.f32.xlu1 %v2183_v46 }
 0x9bb   : > { %v2189_v48 = vpop.xlane.xlu0 %2188 }
 0x9bc   : > { %3173 = vlog2.f32 %v2189_v48 }
 0x9c6   : > { %v3174_v51 = vpop.eup %3173 }
 0x9c7   : > { %v2221_v13 = vmul.f32 0.6931472, %v3174_v51 }
 0x9c9   : > { %v2250_v3 = vadd.f32 %v2221_v13, %v4113_v44 }
 0x9cb   : > { %v2205_v49 = vpop.xlane.xlu0 %2204  ;;  %v2266_v12 = vsub.f32 %v4031_v24, %v2250_v3 }
 0x9cc   : > { %v2191_v56 = vpop.xlane.xlu1 %2190 }
 0x9cd   : > { %3175 = vlog2.f32 %v2191_v56  ;;  %2283 = vst [vmem:[#allocation14 + $0x10] sm:$0xff] %v2266_v12 }
 0x9ce   : > { %3177 = vlog2.f32 %v2205_v49 }
 0x9cf   : > { %v2185_v55 = vpop.xlane.xlu0 %2184 }
 0x9d0   : > { %v2207_v59 = vpop.xlane.xlu1 %2206 }
 0x9d1   : > { %3179 = vlog2.f32 %v2207_v59 }
 0x9d2   : > { %3181 = vlog2.f32 %v2185_v55 }
 0x9d3   : > { %v2201_v9 = vpop.xlane.xlu0 %2200 }
 0x9d7   : > { %v2187_v7 = vpop.xlane.xlu1 %2186  ;;  %v3176_v54 = vpop.eup %3175 }
 0x9d8   : > { %3183 = vlog2.f32 %v2187_v7  ;;  %v3178_v30 = vpop.eup %3177  ;;  %v2223_v62 = vmul.f32 0.6931472, %v3176_v54 }
 0x9d9   : > { %3185 = vlog2.f32 %v2201_v9  ;;  %v2237_v63 = vmul.f32 0.6931472, %v3178_v30 }
 0x9da   : > { %v2251_v11 = vadd.f32 %v2223_v62, %v4119_v50 }
 0x9db   : > { %v2203_v37 = vpop.xlane.xlu1 %2202  ;;  %v2197_v16 = vpop.xlane.xlu0 %2196  ;;  %v2258_v14 = vadd.f32 %v2237_v63, %v4111_v47 }
 0x9dc   : > { %3187 = vlog2.f32 %v2203_v37  ;;  %v3180_v20 = vpop.eup %3179  ;;  %v2267_v43 = vsub.f32 %v4037_v19, %v2251_v11 }
 0x9dd   : > { %3189 = vlog2.f32 %v2197_v16  ;;  %v3182_v15 = vpop.eup %3181  ;;  %v2239_v44 = vmul.f32 0.6931472, %v3180_v20  ;;  %v2274_v36 = vsub.f32 %v4033_v27, %v2258_v14 }
 0x9de   : > { %v2217_v23 = vmul.f32 0.6931472, %v3182_v15  ;;  %2284 = vst [vmem:[#allocation14 + $0x18] sm:$0xff] %v2267_v43 }
 0x9df   : > { %v2199_v25 = vpop.xlane.xlu1 %2198  ;;  %v2193_v24 = vpop.xlane.xlu0 %2192  ;;  %v2259_v29 = vadd.f32 %v2239_v44, %v4127_v1  ;;  %2291 = vst [vmem:[#allocation14 + $0x50] sm:$0xff] %v2274_v36 }
 0x9e0   : > { %3191 = vlog2.f32 %v2199_v25  ;;  %v2248_v50 = vadd.f32 %v2217_v23, %v4121_v0 }
 0x9e1   : > { %3193 = vlog2.f32 %v2193_v24  ;;  %v2275_v47 = vsub.f32 %v4047_v5, %v2259_v29 }
 0x9e2   : > { %v3184_v52 = vpop.eup %3183  ;;  %v2264_v19 = vsub.f32 %v4035_v61, %v2248_v50 }
 0x9e3   : > { %v3186_v32 = vpop.eup %3185  ;;  %v2219_v38 = vmul.f32 0.6931472, %v3184_v52  ;;  %v2195_v39 = vpop.xlane.xlu1 %2194  ;;  %2292 = vst [vmem:[#allocation14 + $0x58] sm:$0xff] %v2275_v47 }
 0x9e4   : > { %v2209_v27 = vpop.xlane.xlu0 %2208  ;;  %v2233_v45 = vmul.f32 0.6931472, %v3186_v32  ;;  %3195 = vlog2.f32 %v2195_v39  ;;  %2281 = vst [vmem:[#allocation14] sm:$0xff] %v2264_v19 }
 0x9e5   : > { %v2249_v1 = vadd.f32 %v2219_v38, %v4137_v60  ;;  %3197 = vlog2.f32 %v2209_v27 }
 0x9e6   : > { %v3188_v46 = vpop.eup %3187  ;;  %v2256_v0 = vadd.f32 %v2233_v45, %v4129_v2 }
 0x9e7   : > { %v3190_v48 = vpop.eup %3189  ;;  %v2265_v56 = vsub.f32 %v4055_v17, %v2249_v1  ;;  %v2235_v5 = vmul.f32 0.6931472, %v3188_v46  ;;  %v2211_v49 = vpop.xlane.xlu1 %2210 }
 0x9e8   : > { %v2213_v59 = vpop.xlane.xlu0 %2212  ;;  %v2272_v61 = vsub.f32 %v4045_v4, %v2256_v0  ;;  %v2229_v55 = vmul.f32 0.6931472, %v3190_v48  ;;  %3199 = vlog2.f32 %v2211_v49 }
 0x9e9   : > { %2282 = vst [vmem:[#allocation14 + $0x8] sm:$0xff] %v2265_v56  ;;  %v2257_v51 = vadd.f32 %v2235_v5, %v4135_v57  ;;  %3201 = vlog2.f32 %v2213_v59 }
 0x9ea   : > { %v3192_v13 = vpop.eup %3191  ;;  %2289 = vst [vmem:[#allocation14 + $0x40] sm:$0xff] %v2272_v61  ;;  %v2254_v60 = vadd.f32 %v2229_v55, %v4145_v6 }
 0x9eb   : > { %v3194_v7 = vpop.eup %3193  ;;  %v2273_v2 = vsub.f32 %v4057_v18, %v2257_v51  ;;  %v2231_v9 = vmul.f32 0.6931472, %v3192_v13  ;;  %v2215_v17 = vpop.xlane.xlu1 %2214 }
 0x9ec   : > { %v2270_v54 = vsub.f32 %v4065_v34, %v2254_v60  ;;  %v2225_v3 = vmul.f32 0.6931472, %v3194_v7  ;;  %3203 = vlog2.f32 %v2215_v17 }
 0x9ed   : > { %2290 = vst [vmem:[#allocation14 + $0x48] sm:$0xff] %v2273_v2  ;;  %v2255_v4 = vadd.f32 %v2231_v9, %v4143_v31 }
 0x9ee   : > { %v3196_v30 = vpop.eup %3195  ;;  %2287 = vst [vmem:[#allocation14 + $0x30] sm:$0xff] %v2270_v54  ;;  %v2252_v57 = vadd.f32 %v2225_v3, %v4155_v22 }
 0x9ef   : > { %v3198_v62 = vpop.eup %3197  ;;  %v2271_v12 = vsub.f32 %v4067_v28, %v2255_v4  ;;  %v2227_v6 = vmul.f32 0.6931472, %v3196_v30 }
 0x9f0   : > { %v2268_v63 = vsub.f32 %v4081_v26, %v2252_v57  ;;  %v2241_v18 = vmul.f32 0.6931472, %v3198_v62 }
 0x9f1   : > { %2288 = vst [vmem:[#allocation14 + $0x38] sm:$0xff] %v2271_v12  ;;  %v2253_v37 = vadd.f32 %v2227_v6, %v4153_v21 }
 0x9f2   : > { %v3200_v34 = vpop.eup %3199  ;;  %2285 = vst [vmem:[#allocation14 + $0x20] sm:$0xff] %v2268_v63  ;;  %v2260_v16 = vadd.f32 %v2241_v18, %v4167_v58 }
 0x9f3   : > { %v3202_v11 = vpop.eup %3201  ;;  %v2269_v31 = vsub.f32 %v4083_v42, %v2253_v37  ;;  %v2243_v20 = vmul.f32 0.6931472, %v3200_v34 }
 0x9f4   : > { %v2276_v22 = vsub.f32 %v4085_v35, %v2260_v16  ;;  %v2245_v14 = vmul.f32 0.6931472, %v3202_v11 }
 0x9f5   : > { %2286 = vst [vmem:[#allocation14 + $0x28] sm:$0xff] %v2269_v31  ;;  %v2261_v28 = vadd.f32 %v2243_v20, %v4165_v40 }
 0x9f6   : > { %v3204_v15 = vpop.eup %3203  ;;  %2293 = vst [vmem:[#allocation14 + $0x60] sm:$0xff] %v2276_v22  ;;  %v2262_v26 = vadd.f32 %v2245_v14, %v4179_v8 }
 0x9f7   : > { %v2277_v21 = vsub.f32 %v4087_v33, %v2261_v28  ;;  %v2247_v43 = vmul.f32 0.6931472, %v3204_v15 }
 0x9f8   : > { %v2278_v44 = vsub.f32 %v4101_v53, %v2262_v26 }
 0x9f9   : > { %2294 = vst [vmem:[#allocation14 + $0x68] sm:$0xff] %v2277_v21  ;;  %v2263_v58 = vadd.f32 %v2247_v43, %v4177_v10 }
 0x9fa   : > { %2295 = vst [vmem:[#allocation14 + $0x70] sm:$0xff] %v2278_v44 }
 0x9fb   : > { %v2279_v42 = vsub.f32 %v4103_v41, %v2263_v58 }
 0x9fd   : > { %2296 = vst [vmem:[#allocation14 + $0x78] sm:$0xff] %v2279_v42 }
 0x9fe PF: > { %p2954_p5 = scmp.eq.s32.totalorder %s3520_s30, 2  ;;  %s3448_s24 = smov [#allocation14]  }
 0x9ff   : > { %s2303_s12 = sshll.u32 %s3448_s24, 4  ;;  %s2304_s12 = int_to_ptr.vmem [resolvable:$true] %s2303_s12 }
 0xa00   : > { %s3347_s10 = scalar_lea.vmem %s2304_s12, 2048  ;;  %p3354_p7 = scmp.lt.s32.totalorder %s2304_s12, %s2304_s12 }
 0xa01   : > { %p3348_p12 = scmp.ne.s32.totalorder %s2304_s12, %s3347_s10  ;;  %p3355_p11 = scmp.lt.s32.totalorder %s3347_s10, %s3347_s10 }
 0xa03   : > { %p3349_p8 = pnand %p3348_p12, %p2954_p5  ;;  %p3356_p13 = por %p3355_p11, %p3354_p7 }
 0xa05   : > { %p3350_p10 = pneg %p3349_p8 }
 0xa07   : > { %p3357_p2 = pnand %p3356_p13, %p3350_p10 }
 0xa09   : > { %3360 = shalt.err (!%p3357_p2)
}
 0xa0a   : > { %s3361_s16 = scalar_lea.hbm %s4287_s7, 2048 }
 0xa0b   : > { %p3362_p6 = scmp.ne.s32.totalorder %s4287_s7, %s3361_s16  ;;  %p3367_p3 = scmp.lt.u32.totalorder %s3361_s16, %s4287_s7 }
 0xa0d   : > { %p3363_p9 = pnand %p3362_p6, %p2954_p5 }
 0xa0f   : > { %p3364_p0 = pneg %p3363_p9 }
 0xa11   : > { %p3369_p1 = pnand %p3367_p3, %p3364_p0 }
 0xa13   : > { %3372 = shalt.err (!%p3369_p1)
}
 0xa14   : > { %s3449_s11 = smov 128   ;;  %s3450_s19 = smov 8  }
 0xa15   : > { %2925 = dma.vmem_to_hbm [thread:$0]  (%p2954_p5), %s2304_s12, 2048, %s4287_s7, [#allocation7], %s3449_s11, %s3449_s11, %s3450_s19  }
 0xa16   : > { %3414 = dma.done.wait (%p2954_p5), [#allocation7], 2048  }
 0xa17   : > { %3416 = vsyncadd (%p2954_p5), [#allocation7], 4294965248 }
 0xa18 PF: > { %s23_s29 = sadd.s32 1, %s3439_s29   ;;  %s4311_s24 = smov %s3423_s25 }
 0xa19   : > { %p20_p4 = scmp.ge.s32.totalorder %s23_s29, 5   ;;  %s4312_s25 = smov %s3427_s26 }
 0xa1a   : > { %s4313_s26 = smov %s3665_s15  ;;  %s4314_s27 = smov %s3435_s28 }
 0xa1b   : > { %s4315_s28 = smov %s4317_s20  ;;  %22 = sbr.rel (!%p20_p4) target bundleno = 9 (0x9), region = 132 }
 0xa22   :  { %2319 = vsyncpa [#allocation6], 1 }
 0xa23   :  { %2321 = vsyncpa [#allocation6 + $0x1], 1 }
 0xa24   :  { %2322 = vsyncpa [#allocation9], 1 }
 0xa25   :  { %2323 = vsyncpa [#allocation12], 1 }
 0xa26   :  { %2325 = vsyncpa [#allocation12 + $0x1], 1 }
 0xa27   :  { %2326 = vsyncpa [#allocation7], 1 }
 0xa28   :  { %2328 = vsyncpa [#allocation7 + $0x1], 1 }

</bundles_post_ra>
